<compile_context>
chip_gen: v6e
topology: v6e:2x2x1
jax: 0.10.0
libtpu: 0.0.40
codegen_flags: <defaults>
</compile_context>

<pallas_src>
import math
from functools import partial

import jax
import jax.numpy as jnp
from jax.experimental import pallas as pl
from jax.experimental.pallas import tpu as pltpu


# ----------------------------- in-kernel helpers ----------------------------

def _ln(x, g, b, eps=1e-12):
    mu = jnp.mean(x, axis=-1, keepdims=True)
    var = jnp.mean(jnp.square(x - mu), axis=-1, keepdims=True)
    return (x - mu) * jax.lax.rsqrt(var + eps) * g + b


def _gelu(x):
    # Exact (erf) GELU for parity with torch.nn.functional.gelu's default.
    # (tanh-approx GELU would be cheaper on v5e -- EUP instead of a VALU
    #  polynomial -- but diverges slightly from the reference.)
    return 0.5 * x * (1.0 + jax.lax.erf(x * (1.0 / math.sqrt(2.0))))


# ----------------------------- encoder kernel -------------------------------
# One grid step == one (batch element, transformer layer). The activation is
# carried in seq_ref (output block resident across the layer axis); the pooler
# is fused into the last layer step.

def _encoder_kernel(
    h0_ref, mask_ref,
    qkvw_ref, qb_ref, vb_ref, ow_ref, ob_ref, alg_ref, alb_ref,
    w1_ref, b1_ref, w2_ref, b2_ref, flg_ref, flb_ref,
    pw_ref, pb_ref,
    seq_ref, pooled_ref,
    q3_ref, k3_ref, v3_ref, ctx_ref,
    *, nh, dh,
):
    H = nh * dh
    l = pl.program_id(1)

    @pl.when(l == 0)
    def _():  # initialize the VMEM-resident carry from the normalized embeddings
        seq_ref[...] = h0_ref[...]

    h = seq_ref[...]                                        # (S, H) f32 carry

    # ---- fused QKV projection: one (S, H) x (H, 3H) MXU pass ----
    # TODO(synk): at real BERT shapes tile this (and the FFN) over row blocks
    # so the (S, 3H) value never spills a full slab to VMEM.
    qkv = jnp.dot(h.astype(jnp.bfloat16), qkvw_ref[0],
                  preferred_element_type=jnp.float32)       # (S, 3H) f32

    # 1/sqrt(dh) is folded into the Q weight/bias at pack time; the key bias
    # is dropped (constant along the softmax axis -> mathematically exact).
    q_all = qkv[:, 0:H] + qb_ref[0]
    k_all = qkv[:, H:2 * H]
    v_all = qkv[:, 2 * H:3 * H] + vb_ref[0]

    # Head-major relayout (pure data movement, no MXU): (S, H) -> (nh, S, dh)
    for hd in range(nh):
        c0 = hd * dh
        q3_ref[hd] = q_all[:, c0:c0 + dh].astype(jnp.bfloat16)
        k3_ref[hd] = k_all[:, c0:c0 + dh].astype(jnp.bfloat16)
        v3_ref[hd] = v_all[:, c0:c0 + dh].astype(jnp.bfloat16)

    # ---- batched attention over the head axis (2 batched matmuls instead of
    # 2*nh tiny ones) ----
    s = jnp.einsum('hqd,hkd->hqk', q3_ref[...], k3_ref[...],
                   preferred_element_type=jnp.float32) + mask_ref[...]
    m = jnp.max(s, axis=-1, keepdims=True)
    p = jnp.exp(s - m)
    # EUP reciprocal; use approx=False for bit-level parity with a reference.
    p = p * pl.reciprocal(jnp.sum(p, axis=-1, keepdims=True), approx=True)
    ctx = jnp.einsum('hqk,hkd->hqd', p.astype(jnp.bfloat16), v3_ref[...],
                     preferred_element_type=jnp.float32)    # (nh, S, dh)

    # Re-assemble contexts into one (S, H) buffer -> single o-proj with K = H.
    for hd in range(nh):
        c0 = hd * dh
        ctx_ref[:, c0:c0 + dh] = ctx[hd].astype(jnp.bfloat16)

    attn = jnp.dot(ctx_ref[...], ow_ref[0],
                   preferred_element_type=jnp.float32) + ob_ref[0]

    # ---- o-proj bias + residual + LayerNorm (fused) ----
    h = _ln(h + attn, alg_ref[0], alb_ref[0])

    # ---- FFN: GELU(h W1 + b1) W2 + b2, residual + LayerNorm (fused) ----
    f = jnp.dot(h.astype(jnp.bfloat16), w1_ref[0],
                preferred_element_type=jnp.float32) + b1_ref[0]
    f = _gelu(f)
    f = jnp.dot(f.astype(jnp.bfloat16), w2_ref[0],
                preferred_element_type=jnp.float32) + b2_ref[0]
    h = _ln(h + f, flg_ref[0], flb_ref[0])

    seq_ref[...] = h                                        # carry to next layer

    # ---- fused pooler on the last layer step: tanh(W h[:, 0, :] + b) ----
    @pl.when(l == pl.num_programs(1) - 1)
    def _():
        cls = h[0:1, :]                                     # CLS row of this batch
        y = jnp.dot(cls.astype(jnp.bfloat16), pw_ref[...],
                    preferred_element_type=jnp.float32) + pb_ref[...]
        pooled_ref[0] = jnp.tanh(y)


# ----------------------------- model glue -----------------------------------

CONFIG = dict(
    vocab_size=100,
    max_position=16,
    type_vocab=2,
    hidden=32,     # NOTE: toy shape; pad to a multiple of 128 for benchmarking
    heads=4,
    intermediate=64,
    layers=2,
)


def init_params(key, cfg):
    std = 0.02
    keys = iter(jax.random.split(key, 64))

    def w(shape):
        return (std * jax.random.normal(next(keys), shape)).astype(jnp.float32)

    zeros = lambda s: jnp.zeros(s, jnp.float32)
    ones = lambda s: jnp.ones(s, jnp.float32)

    H, I = cfg["hidden"], cfg["intermediate"]
    p = {
        "word_emb": w((cfg["vocab_size"], H)),
        "pos_emb": w((cfg["max_position"], H)),
        "type_emb": w((cfg["type_vocab"], H)),
        "emb_ln_g": ones((H,)), "emb_ln_b": zeros((H,)),
        "pooler_w": w((H, H)), "pooler_b": zeros((H,)),
        "layers": [],
    }
    for _ in range(cfg["layers"]):
        p["layers"].append({
            "q_w": w((H, H)), "q_b": zeros((H,)),
            "k_w": w((H, H)), "k_b": zeros((H,)),
            "v_w": w((H, H)), "v_b": zeros((H,)),
            "o_w": w((H, H)), "o_b": zeros((H,)),
            "attn_ln_g": ones((H,)), "attn_ln_b": zeros((H,)),
            "ffn_w1": w((H, I)), "ffn_b1": zeros((I,)),
            "ffn_w2": w((I, H)), "ffn_b2": zeros((H,)),
            "ffn_ln_g": ones((H,)), "ffn_ln_b": zeros((H,)),
        })
    return p


def pack_params(params, cfg):
    """Stack per-layer weights into [L, ...]; MXU operands -> bf16.
    1/sqrt(dh) is folded into the Q weight/bias; the key bias is dropped
    (softmax-invariant, exact)."""
    ls = params["layers"]
    bf = jnp.bfloat16
    H = cfg["hidden"]
    dh = H // cfg["heads"]
    scale = 1.0 / math.sqrt(dh)
    return dict(
        word_emb=params["word_emb"],
        pos_emb=params["pos_emb"],
        type_emb=params["type_emb"],
        emb_ln_g=params["emb_ln_g"],
        emb_ln_b=params["emb_ln_b"],
        qkv_w=jnp.stack([jnp.concatenate(
            [l["q_w"] * scale, l["k_w"], l["v_w"]], axis=1)
            for l in ls]).astype(bf),                              # (L, H, 3H)
        q_b=jnp.stack([(l["q_b"] * scale)[None, :] for l in ls]),  # (L, 1, H)
        v_b=jnp.stack([l["v_b"][None, :] for l in ls]),            # (L, 1, H)
        o_w=jnp.stack([l["o_w"] for l in ls]).astype(bf),
        o_b=jnp.stack([l["o_b"][None, :] for l in ls]),
        attn_ln_g=jnp.stack([l["attn_ln_g"][None, :] for l in ls]),
        attn_ln_b=jnp.stack([l["attn_ln_b"][None, :] for l in ls]),
        ffn_w1=jnp.stack([l["ffn_w1"] for l in ls]).astype(bf),
        ffn_b1=jnp.stack([l["ffn_b1"][None, :] for l in ls]),
        ffn_w2=jnp.stack([l["ffn_w2"] for l in ls]).astype(bf),
        ffn_b2=jnp.stack([l["ffn_b2"][None, :] for l in ls]),
        ffn_ln_g=jnp.stack([l["ffn_ln_g"][None, :] for l in ls]),
        ffn_ln_b=jnp.stack([l["ffn_ln_b"][None, :] for l in ls]),
        pooler_w=params["pooler_w"].astype(bf),
        pooler_b=params["pooler_b"].reshape(1, -1),
    )


def bert_wrapper_forward(packed, input_ids, token_type_ids, attention_mask, cfg):
    B, S = input_ids.shape
    H, I = cfg["hidden"], cfg["intermediate"]
    nh = cfg["heads"]
    dh = H // nh
    L = cfg["layers"]

    # --- embeddings: gathers + embeddings LayerNorm are plain-JAX glue (tiny
    # prologue; keeps the emb block out of VMEM residency for all L steps) ---
    positions = jnp.arange(S, dtype=jnp.int32)
    emb = (jnp.take(packed["word_emb"], input_ids, axis=0)
           + jnp.take(packed["pos_emb"], positions, axis=0)[None, :, :]
           + jnp.take(packed["type_emb"], token_type_ids, axis=0))
    mu = jnp.mean(emb, axis=-1, keepdims=True)
    var = jnp.mean(jnp.square(emb - mu), axis=-1, keepdims=True)
    h0 = ((emb - mu) * jax.lax.rsqrt(var + 1e-12)
          * packed["emb_ln_g"] + packed["emb_ln_b"]).reshape(B * S, H)

    # additive attention mask, NOT replicated per head: [B, 1, S]
    add_mask = ((1.0 - attention_mask.astype(jnp.float32)) * -10000.0
                ).reshape(B, 1, S)

    per_batch = pl.BlockSpec((S, H), lambda b, l: (b, 0))
    per_layer = lambda s: pl.BlockSpec((1,) + s, lambda b, l: (l, 0, 0))
    const2 = lambda s: pl.BlockSpec(s, lambda b, l: (0, 0))

    kernel = partial(_encoder_kernel, nh=nh, dh=dh)
    seq2d, pooled3d = pl.pallas_call(
        kernel,
        out_shape=(jax.ShapeDtypeStruct((B * S, H), jnp.float32),
                   jax.ShapeDtypeStruct((B, 1, H), jnp.float32)),
        grid_spec=pltpu.PrefetchScalarGridSpec(
            num_scalar_prefetch=0,
            grid=(B, L),                                  # batch parallel, layers sequential
            in_specs=[
                per_batch,                                # normalized embeddings (layer-0 init)
                pl.BlockSpec((1, 1, S), lambda b, l: (b, 0, 0)),   # additive mask
                per_layer((H, 3 * H)),                    # fused QKV weight (Q pre-scaled)
                per_layer((1, H)), per_layer((1, H)),     # q bias (scaled), v bias
                per_layer((H, H)), per_layer((1, H)),     # o-proj
                per_layer((1, H)), per_layer((1, H)),     # attn LN
                per_layer((H, I)), per_layer((1, I)),     # ffn w1, b1
                per_layer((I, H)), per_layer((1, H)),     # ffn w2, b2
                per_layer((1, H)), per_layer((1, H)),     # ffn LN
                const2((H, H)), const2((1, H)),           # pooler (fused, last step)
            ],
            out_specs=[
                per_batch,                                # sequence output == activation carry
                pl.BlockSpec((1, 1, H), lambda b, l: (b, 0, 0)),   # pooled output
            ],
            scratch_shapes=[
                pltpu.VMEM((nh, S, dh), jnp.bfloat16),    # q (head-major)
                pltpu.VMEM((nh, S, dh), jnp.bfloat16),    # k
                pltpu.VMEM((nh, S, dh), jnp.bfloat16),    # v
                pltpu.VMEM((S, H), jnp.bfloat16),         # assembled context
            ],
        ),
        compiler_params=pltpu.CompilerParams(
            # batch axis -> both TensorCores on v7x; layer axis is the carry.
            dimension_semantics=("parallel", "arbitrary"),
            # Toy working set is tiny; size this from the per-layer weight +
            # activation working set at real BERT shapes.
            vmem_limit_bytes=32 * 1024 * 1024),
    )(h0, add_mask,
      packed["qkv_w"], packed["q_b"], packed["v_b"],
      packed["o_w"], packed["o_b"],
      packed["attn_ln_g"], packed["attn_ln_b"],
      packed["ffn_w1"], packed["ffn_b1"], packed["ffn_w2"], packed["ffn_b2"],
      packed["ffn_ln_g"], packed["ffn_ln_b"],
      packed["pooler_w"], packed["pooler_b"])

    seq_out = seq2d.reshape(B, S, H)
    pooled_out = pooled3d.reshape(B, H)
    # Mirrors BertModel's (sequence_output, pooled_output) return convention.
    return seq_out, pooled_out


# ---------------------------------- main -------------------------------------

if __name__ == "__main__":
    cfg = CONFIG
    B, S = 2, 8

    key = jax.random.PRNGKey(0)
    k_param, k_ids, k_type = jax.random.split(key, 3)

    params = init_params(k_param, cfg)
    packed = pack_params(params, cfg)

    input_ids = jax.random.randint(k_ids, (B, S), 0, cfg["vocab_size"],
                                   dtype=jnp.int32)
    token_type_ids = jax.random.randint(k_type, (B, S), 0, cfg["type_vocab"],
                                        dtype=jnp.int32)
    attention_mask = jnp.ones((B, S), dtype=jnp.int32)

    fwd = jax.jit(partial(bert_wrapper_forward, cfg=cfg))
    seq_out, pooled_out = fwd(packed, input_ids, token_type_ids, attention_mask)
    jax.block_until_ready((seq_out, pooled_out))

    assert seq_out.shape == (B, S, cfg["hidden"])
    assert pooled_out.shape == (B, cfg["hidden"])
    assert bool(jnp.all(jnp.isfinite(seq_out)))
    assert bool(jnp.all(jnp.isfinite(pooled_out)))
    print("KERNEL_OK")
</pallas_src>

<mosaic_0001>
module attributes {stable_mosaic.version = 11 : i64} {
  func.func @_encoder_kernel(%arg0: i32, %arg1: i32, %arg2: memref<8x32xf32, #tpu.memory_space<vmem>>, %arg3: memref<1x1x8xf32, #tpu.memory_space<vmem>>, %arg4: memref<1x32x96xbf16, #tpu.memory_space<vmem>>, %arg5: memref<1x1x32xf32, #tpu.memory_space<vmem>>, %arg6: memref<1x1x32xf32, #tpu.memory_space<vmem>>, %arg7: memref<1x32x32xbf16, #tpu.memory_space<vmem>>, %arg8: memref<1x1x32xf32, #tpu.memory_space<vmem>>, %arg9: memref<1x1x32xf32, #tpu.memory_space<vmem>>, %arg10: memref<1x1x32xf32, #tpu.memory_space<vmem>>, %arg11: memref<1x32x64xbf16, #tpu.memory_space<vmem>>, %arg12: memref<1x1x64xf32, #tpu.memory_space<vmem>>, %arg13: memref<1x64x32xbf16, #tpu.memory_space<vmem>>, %arg14: memref<1x1x32xf32, #tpu.memory_space<vmem>>, %arg15: memref<1x1x32xf32, #tpu.memory_space<vmem>>, %arg16: memref<1x1x32xf32, #tpu.memory_space<vmem>>, %arg17: memref<32x32xbf16, #tpu.memory_space<vmem>>, %arg18: memref<1x32xf32, #tpu.memory_space<vmem>>, %arg19: memref<8x32xf32, #tpu.memory_space<vmem>>, %arg20: memref<1x1x32xf32, #tpu.memory_space<vmem>>, %arg21: memref<4x8x8xbf16, #tpu.memory_space<vmem>>, %arg22: memref<4x8x8xbf16, #tpu.memory_space<vmem>>, %arg23: memref<4x8x8xbf16, #tpu.memory_space<vmem>>, %arg24: memref<8x32xbf16, #tpu.memory_space<vmem>>) attributes {dimension_semantics = [#tpu.dimension_semantics<parallel>, #tpu.dimension_semantics<arbitrary>], iteration_bounds = array<i64: 2, 2>, scalar_prefetch = 0 : i64, scratch_operands = 4 : i64, tpu.core_type = #tpu.core_type<tc>, window_params = [{transform_indices = @transform_0, window_bounds = array<i64: 8, 32>}, {transform_indices = @transform_1, window_bounds = array<i64: 1, 1, 8>}, {transform_indices = @transform_2, window_bounds = array<i64: 1, 32, 96>}, {transform_indices = @transform_3, window_bounds = array<i64: 1, 1, 32>}, {transform_indices = @transform_4, window_bounds = array<i64: 1, 1, 32>}, {transform_indices = @transform_5, window_bounds = array<i64: 1, 32, 32>}, {transform_indices = @transform_6, window_bounds = array<i64: 1, 1, 32>}, {transform_indices = @transform_7, window_bounds = array<i64: 1, 1, 32>}, {transform_indices = @transform_8, window_bounds = array<i64: 1, 1, 32>}, {transform_indices = @transform_9, window_bounds = array<i64: 1, 32, 64>}, {transform_indices = @transform_10, window_bounds = array<i64: 1, 1, 64>}, {transform_indices = @transform_11, window_bounds = array<i64: 1, 64, 32>}, {transform_indices = @transform_12, window_bounds = array<i64: 1, 1, 32>}, {transform_indices = @transform_13, window_bounds = array<i64: 1, 1, 32>}, {transform_indices = @transform_14, window_bounds = array<i64: 1, 1, 32>}, {pipeline_mode = #tpu.pipeline_mode<synchronous>, transform_indices = @transform_15, window_bounds = array<i64: 32, 32>}, {pipeline_mode = #tpu.pipeline_mode<synchronous>, transform_indices = @transform_16, window_bounds = array<i64: 1, 32>}, {transform_indices = @transform_17, window_bounds = array<i64: 8, 32>}, {transform_indices = @transform_18, window_bounds = array<i64: 1, 1, 32>}]} {
    %c0_i32 = arith.constant 0 : i32
    %0 = arith.cmpi eq, %arg1, %c0_i32 : i32
    %1 = arith.extui %0 : i1 to i32
    %c0_i32_0 = arith.constant 0 : i32
    %2 = arith.cmpi ne, %1, %c0_i32_0 : i32
    scf.if %2 {
      %c0_116 = arith.constant 0 : index
      %c0_117 = arith.constant 0 : index
      %204 = vector.load %arg2[%c0_116, %c0_117] : memref<8x32xf32, #tpu.memory_space<vmem>>, vector<8x32xf32>
      %c0_118 = arith.constant 0 : index
      %c0_119 = arith.constant 0 : index
      %205 = vector.load %arg19[%c0_118, %c0_119] : memref<8x32xf32, #tpu.memory_space<vmem>>, vector<8x32xf32>
      tpu.vector_store %arg19[%c0_118, %c0_119], %204 {strides = array<i32>} : memref<8x32xf32, #tpu.memory_space<vmem>>, vector<8x32xf32>,
    } else {
    }
    %c0 = arith.constant 0 : index
    %c0_1 = arith.constant 0 : index
    %3 = vector.load %arg19[%c0, %c0_1] : memref<8x32xf32, #tpu.memory_space<vmem>>, vector<8x32xf32>
    %4 = arith.truncf %3 : vector<8x32xf32> to vector<8x32xbf16>
    %c0_2 = arith.constant 0 : index
    %c0_3 = arith.constant 0 : index
    %c0_4 = arith.constant 0 : index
    %5 = vector.load %arg4[%c0_2, %c0_3, %c0_4] : memref<1x32x96xbf16, #tpu.memory_space<vmem>>, vector<1x32x96xbf16>
    %6 = vector.shape_cast %5 : vector<1x32x96xbf16> to vector<32x96xbf16>
    %cst = arith.constant dense<0.000000e+00> : vector<8x96xf32>
    %7 = tpu.matmul %4, %6, %cst {dimension_numbers = #tpu.dot_dimension_numbers<[1], [0], [0], [1], [0, 0, 1, 1], [], []>} : vector<8x32xbf16>, vector<32x96xbf16>, vector<8x96xf32> -> vector<8x96xf32>
    %8 = vector.extract_strided_slice %7 {offsets = [0, 0], sizes = [8, 32], strides = [1, 1]} : vector<8x96xf32> to vector<8x32xf32>
    %c0_5 = arith.constant 0 : index
    %c0_6 = arith.constant 0 : index
    %c0_7 = arith.constant 0 : index
    %9 = vector.load %arg5[%c0_5, %c0_6, %c0_7] : memref<1x1x32xf32, #tpu.memory_space<vmem>>, vector<1x1x32xf32>
    %10 = vector.shape_cast %9 : vector<1x1x32xf32> to vector<1x32xf32>
    %11 = vector.broadcast %10 : vector<1x32xf32> to vector<8x32xf32>
    %12 = arith.addf %8, %11 : vector<8x32xf32>
    %13 = vector.extract_strided_slice %7 {offsets = [0, 32], sizes = [8, 32], strides = [1, 1]} : vector<8x96xf32> to vector<8x32xf32>
    %14 = vector.extract_strided_slice %7 {offsets = [0, 64], sizes = [8, 32], strides = [1, 1]} : vector<8x96xf32> to vector<8x32xf32>
    %c0_8 = arith.constant 0 : index
    %c0_9 = arith.constant 0 : index
    %c0_10 = arith.constant 0 : index
    %15 = vector.load %arg6[%c0_8, %c0_9, %c0_10] : memref<1x1x32xf32, #tpu.memory_space<vmem>>, vector<1x1x32xf32>
    %16 = vector.shape_cast %15 : vector<1x1x32xf32> to vector<1x32xf32>
    %17 = vector.broadcast %16 : vector<1x32xf32> to vector<8x32xf32>
    %18 = arith.addf %14, %17 : vector<8x32xf32>
    %19 = vector.extract_strided_slice %12 {offsets = [0, 0], sizes = [8, 8], strides = [1, 1]} : vector<8x32xf32> to vector<8x8xf32>
    %20 = arith.truncf %19 : vector<8x8xf32> to vector<8x8xbf16>
    %c0_11 = arith.constant 0 : index
    %c0_12 = arith.constant 0 : index
    %c0_13 = arith.constant 0 : index
    %21 = vector.load %arg21[%c0_11, %c0_12, %c0_13] : memref<4x8x8xbf16, #tpu.memory_space<vmem>>, vector<1x8x8xbf16>
    %22 = vector.shape_cast %21 : vector<1x8x8xbf16> to vector<8x8xbf16>
    %23 = vector.shape_cast %20 : vector<8x8xbf16> to vector<1x8x8xbf16>
    tpu.vector_store %arg21[%c0_11, %c0_12, %c0_13], %23 {strides = array<i32>} : memref<4x8x8xbf16, #tpu.memory_space<vmem>>, vector<1x8x8xbf16>,
    %24 = vector.extract_strided_slice %13 {offsets = [0, 0], sizes = [8, 8], strides = [1, 1]} : vector<8x32xf32> to vector<8x8xf32>
    %25 = arith.truncf %24 : vector<8x8xf32> to vector<8x8xbf16>
    %c0_14 = arith.constant 0 : index
    %c0_15 = arith.constant 0 : index
    %c0_16 = arith.constant 0 : index
    %26 = vector.load %arg22[%c0_14, %c0_15, %c0_16] : memref<4x8x8xbf16, #tpu.memory_space<vmem>>, vector<1x8x8xbf16>
    %27 = vector.shape_cast %26 : vector<1x8x8xbf16> to vector<8x8xbf16>
    %28 = vector.shape_cast %25 : vector<8x8xbf16> to vector<1x8x8xbf16>
    tpu.vector_store %arg22[%c0_14, %c0_15, %c0_16], %28 {strides = array<i32>} : memref<4x8x8xbf16, #tpu.memory_space<vmem>>, vector<1x8x8xbf16>,
    %29 = vector.extract_strided_slice %18 {offsets = [0, 0], sizes = [8, 8], strides = [1, 1]} : vector<8x32xf32> to vector<8x8xf32>
    %30 = arith.truncf %29 : vector<8x8xf32> to vector<8x8xbf16>
    %c0_17 = arith.constant 0 : index
    %c0_18 = arith.constant 0 : index
    %c0_19 = arith.constant 0 : index
    %31 = vector.load %arg23[%c0_17, %c0_18, %c0_19] : memref<4x8x8xbf16, #tpu.memory_space<vmem>>, vector<1x8x8xbf16>
    %32 = vector.shape_cast %31 : vector<1x8x8xbf16> to vector<8x8xbf16>
    %33 = vector.shape_cast %30 : vector<8x8xbf16> to vector<1x8x8xbf16>
    tpu.vector_store %arg23[%c0_17, %c0_18, %c0_19], %33 {strides = array<i32>} : memref<4x8x8xbf16, #tpu.memory_space<vmem>>, vector<1x8x8xbf16>,
    %34 = vector.extract_strided_slice %12 {offsets = [0, 8], sizes = [8, 8], strides = [1, 1]} : vector<8x32xf32> to vector<8x8xf32>
    %35 = arith.truncf %34 : vector<8x8xf32> to vector<8x8xbf16>
    %c1 = arith.constant 1 : index
    %c0_20 = arith.constant 0 : index
    %c0_21 = arith.constant 0 : index
    %36 = vector.load %arg21[%c1, %c0_20, %c0_21] : memref<4x8x8xbf16, #tpu.memory_space<vmem>>, vector<1x8x8xbf16>
    %37 = vector.shape_cast %36 : vector<1x8x8xbf16> to vector<8x8xbf16>
    %38 = vector.shape_cast %35 : vector<8x8xbf16> to vector<1x8x8xbf16>
    tpu.vector_store %arg21[%c1, %c0_20, %c0_21], %38 {strides = array<i32>} : memref<4x8x8xbf16, #tpu.memory_space<vmem>>, vector<1x8x8xbf16>,
    %39 = vector.extract_strided_slice %13 {offsets = [0, 8], sizes = [8, 8], strides = [1, 1]} : vector<8x32xf32> to vector<8x8xf32>
    %40 = arith.truncf %39 : vector<8x8xf32> to vector<8x8xbf16>
    %c1_22 = arith.constant 1 : index
    %c0_23 = arith.constant 0 : index
    %c0_24 = arith.constant 0 : index
    %41 = vector.load %arg22[%c1_22, %c0_23, %c0_24] : memref<4x8x8xbf16, #tpu.memory_space<vmem>>, vector<1x8x8xbf16>
    %42 = vector.shape_cast %41 : vector<1x8x8xbf16> to vector<8x8xbf16>
    %43 = vector.shape_cast %40 : vector<8x8xbf16> to vector<1x8x8xbf16>
    tpu.vector_store %arg22[%c1_22, %c0_23, %c0_24], %43 {strides = array<i32>} : memref<4x8x8xbf16, #tpu.memory_space<vmem>>, vector<1x8x8xbf16>,
    %44 = vector.extract_strided_slice %18 {offsets = [0, 8], sizes = [8, 8], strides = [1, 1]} : vector<8x32xf32> to vector<8x8xf32>
    %45 = arith.truncf %44 : vector<8x8xf32> to vector<8x8xbf16>
    %c1_25 = arith.constant 1 : index
    %c0_26 = arith.constant 0 : index
    %c0_27 = arith.constant 0 : index
    %46 = vector.load %arg23[%c1_25, %c0_26, %c0_27] : memref<4x8x8xbf16, #tpu.memory_space<vmem>>, vector<1x8x8xbf16>
    %47 = vector.shape_cast %46 : vector<1x8x8xbf16> to vector<8x8xbf16>
    %48 = vector.shape_cast %45 : vector<8x8xbf16> to vector<1x8x8xbf16>
    tpu.vector_store %arg23[%c1_25, %c0_26, %c0_27], %48 {strides = array<i32>} : memref<4x8x8xbf16, #tpu.memory_space<vmem>>, vector<1x8x8xbf16>,
    %49 = vector.extract_strided_slice %12 {offsets = [0, 16], sizes = [8, 8], strides = [1, 1]} : vector<8x32xf32> to vector<8x8xf32>
    %50 = arith.truncf %49 : vector<8x8xf32> to vector<8x8xbf16>
    %c2 = arith.constant 2 : index
    %c0_28 = arith.constant 0 : index
    %c0_29 = arith.constant 0 : index
    %51 = vector.load %arg21[%c2, %c0_28, %c0_29] : memref<4x8x8xbf16, #tpu.memory_space<vmem>>, vector<1x8x8xbf16>
    %52 = vector.shape_cast %51 : vector<1x8x8xbf16> to vector<8x8xbf16>
    %53 = vector.shape_cast %50 : vector<8x8xbf16> to vector<1x8x8xbf16>
    tpu.vector_store %arg21[%c2, %c0_28, %c0_29], %53 {strides = array<i32>} : memref<4x8x8xbf16, #tpu.memory_space<vmem>>, vector<1x8x8xbf16>,
    %54 = vector.extract_strided_slice %13 {offsets = [0, 16], sizes = [8, 8], strides = [1, 1]} : vector<8x32xf32> to vector<8x8xf32>
    %55 = arith.truncf %54 : vector<8x8xf32> to vector<8x8xbf16>
    %c2_30 = arith.constant 2 : index
    %c0_31 = arith.constant 0 : index
    %c0_32 = arith.constant 0 : index
    %56 = vector.load %arg22[%c2_30, %c0_31, %c0_32] : memref<4x8x8xbf16, #tpu.memory_space<vmem>>, vector<1x8x8xbf16>
    %57 = vector.shape_cast %56 : vector<1x8x8xbf16> to vector<8x8xbf16>
    %58 = vector.shape_cast %55 : vector<8x8xbf16> to vector<1x8x8xbf16>
    tpu.vector_store %arg22[%c2_30, %c0_31, %c0_32], %58 {strides = array<i32>} : memref<4x8x8xbf16, #tpu.memory_space<vmem>>, vector<1x8x8xbf16>,
    %59 = vector.extract_strided_slice %18 {offsets = [0, 16], sizes = [8, 8], strides = [1, 1]} : vector<8x32xf32> to vector<8x8xf32>
    %60 = arith.truncf %59 : vector<8x8xf32> to vector<8x8xbf16>
    %c2_33 = arith.constant 2 : index
    %c0_34 = arith.constant 0 : index
    %c0_35 = arith.constant 0 : index
    %61 = vector.load %arg23[%c2_33, %c0_34, %c0_35] : memref<4x8x8xbf16, #tpu.memory_space<vmem>>, vector<1x8x8xbf16>
    %62 = vector.shape_cast %61 : vector<1x8x8xbf16> to vector<8x8xbf16>
    %63 = vector.shape_cast %60 : vector<8x8xbf16> to vector<1x8x8xbf16>
    tpu.vector_store %arg23[%c2_33, %c0_34, %c0_35], %63 {strides = array<i32>} : memref<4x8x8xbf16, #tpu.memory_space<vmem>>, vector<1x8x8xbf16>,
    %64 = vector.extract_strided_slice %12 {offsets = [0, 24], sizes = [8, 8], strides = [1, 1]} : vector<8x32xf32> to vector<8x8xf32>
    %65 = arith.truncf %64 : vector<8x8xf32> to vector<8x8xbf16>
    %c3 = arith.constant 3 : index
    %c0_36 = arith.constant 0 : index
    %c0_37 = arith.constant 0 : index
    %66 = vector.load %arg21[%c3, %c0_36, %c0_37] : memref<4x8x8xbf16, #tpu.memory_space<vmem>>, vector<1x8x8xbf16>
    %67 = vector.shape_cast %66 : vector<1x8x8xbf16> to vector<8x8xbf16>
    %68 = vector.shape_cast %65 : vector<8x8xbf16> to vector<1x8x8xbf16>
    tpu.vector_store %arg21[%c3, %c0_36, %c0_37], %68 {strides = array<i32>} : memref<4x8x8xbf16, #tpu.memory_space<vmem>>, vector<1x8x8xbf16>,
    %69 = vector.extract_strided_slice %13 {offsets = [0, 24], sizes = [8, 8], strides = [1, 1]} : vector<8x32xf32> to vector<8x8xf32>
    %70 = arith.truncf %69 : vector<8x8xf32> to vector<8x8xbf16>
    %c3_38 = arith.constant 3 : index
    %c0_39 = arith.constant 0 : index
    %c0_40 = arith.constant 0 : index
    %71 = vector.load %arg22[%c3_38, %c0_39, %c0_40] : memref<4x8x8xbf16, #tpu.memory_space<vmem>>, vector<1x8x8xbf16>
    %72 = vector.shape_cast %71 : vector<1x8x8xbf16> to vector<8x8xbf16>
    %73 = vector.shape_cast %70 : vector<8x8xbf16> to vector<1x8x8xbf16>
    tpu.vector_store %arg22[%c3_38, %c0_39, %c0_40], %73 {strides = array<i32>} : memref<4x8x8xbf16, #tpu.memory_space<vmem>>, vector<1x8x8xbf16>,
    %74 = vector.extract_strided_slice %18 {offsets = [0, 24], sizes = [8, 8], strides = [1, 1]} : vector<8x32xf32> to vector<8x8xf32>
    %75 = arith.truncf %74 : vector<8x8xf32> to vector<8x8xbf16>
    %c3_41 = arith.constant 3 : index
    %c0_42 = arith.constant 0 : index
    %c0_43 = arith.constant 0 : index
    %76 = vector.load %arg23[%c3_41, %c0_42, %c0_43] : memref<4x8x8xbf16, #tpu.memory_space<vmem>>, vector<1x8x8xbf16>
    %77 = vector.shape_cast %76 : vector<1x8x8xbf16> to vector<8x8xbf16>
    %78 = vector.shape_cast %75 : vector<8x8xbf16> to vector<1x8x8xbf16>
    tpu.vector_store %arg23[%c3_41, %c0_42, %c0_43], %78 {strides = array<i32>} : memref<4x8x8xbf16, #tpu.memory_space<vmem>>, vector<1x8x8xbf16>,
    %c0_44 = arith.constant 0 : index
    %c0_45 = arith.constant 0 : index
    %c0_46 = arith.constant 0 : index
    %79 = vector.load %arg21[%c0_44, %c0_45, %c0_46] : memref<4x8x8xbf16, #tpu.memory_space<vmem>>, vector<4x8x8xbf16>
    %c0_47 = arith.constant 0 : index
    %c0_48 = arith.constant 0 : index
    %c0_49 = arith.constant 0 : index
    %80 = vector.load %arg22[%c0_47, %c0_48, %c0_49] : memref<4x8x8xbf16, #tpu.memory_space<vmem>>, vector<4x8x8xbf16>
    "tpu.trace_start"() <{level = 10 : i32, message = "hqd,hkd->hqk"}> : () -> ()
    %cst_50 = arith.constant dense<0.000000e+00> : vector<4x8x8xf32>
    %81 = tpu.matmul %79, %80, %cst_50 {dimension_numbers = #tpu.dot_dimension_numbers<[2], [2], [1], [1], [0, 0, 0, 1, 1, 1], [0], [0]>} : vector<4x8x8xbf16>, vector<4x8x8xbf16>, vector<4x8x8xf32> -> vector<4x8x8xf32>
    "tpu.trace_stop"() : () -> ()
    %c0_51 = arith.constant 0 : index
    %c0_52 = arith.constant 0 : index
    %c0_53 = arith.constant 0 : index
    %82 = vector.load %arg3[%c0_51, %c0_52, %c0_53] : memref<1x1x8xf32, #tpu.memory_space<vmem>>, vector<1x1x8xf32>
    %83 = vector.broadcast %82 : vector<1x1x8xf32> to vector<4x8x8xf32>
    %84 = arith.addf %81, %83 : vector<4x8x8xf32>
    %cst_54 = arith.constant dense<0xFF800000> : vector<4x8xf32>
    %85 = vector.multi_reduction <maximumf>, %84, %cst_54 [2] : vector<4x8x8xf32> to vector<4x8xf32>
    %86 = vector.shape_cast %85 : vector<4x8xf32> to vector<4x8x1xf32>
    %87 = vector.broadcast %86 : vector<4x8x1xf32> to vector<4x8x8xf32>
    %88 = arith.subf %84, %87 : vector<4x8x8xf32>
    %89 = math.exp %88 : vector<4x8x8xf32>
    %cst_55 = arith.constant dense<0.000000e+00> : vector<4x8xf32>
    %90 = vector.multi_reduction <add>, %89, %cst_55 [2] : vector<4x8x8xf32> to vector<4x8xf32>
    %91 = vector.shape_cast %90 : vector<4x8xf32> to vector<4x8x1xf32>
    %92 = tpu.reciprocal %91 {approx = true} : vector<4x8x1xf32> -> vector<4x8x1xf32>
    %93 = vector.broadcast %92 : vector<4x8x1xf32> to vector<4x8x8xf32>
    %94 = arith.mulf %89, %93 : vector<4x8x8xf32>
    %95 = arith.truncf %94 : vector<4x8x8xf32> to vector<4x8x8xbf16>
    %c0_56 = arith.constant 0 : index
    %c0_57 = arith.constant 0 : index
    %c0_58 = arith.constant 0 : index
    %96 = vector.load %arg23[%c0_56, %c0_57, %c0_58] : memref<4x8x8xbf16, #tpu.memory_space<vmem>>, vector<4x8x8xbf16>
    "tpu.trace_start"() <{level = 10 : i32, message = "hqk,hkd->hqd"}> : () -> ()
    %cst_59 = arith.constant dense<0.000000e+00> : vector<4x8x8xf32>
    %97 = tpu.matmul %95, %96, %cst_59 {dimension_numbers = #tpu.dot_dimension_numbers<[2], [1], [1], [2], [0, 0, 0, 1, 1, 2], [0], [0]>} : vector<4x8x8xbf16>, vector<4x8x8xbf16>, vector<4x8x8xf32> -> vector<4x8x8xf32>
    "tpu.trace_stop"() : () -> ()
    %98 = vector.extract_strided_slice %97 {offsets = [0, 0, 0], sizes = [1, 8, 8], strides = [1, 1, 1]} : vector<4x8x8xf32> to vector<1x8x8xf32>
    %99 = vector.shape_cast %98 : vector<1x8x8xf32> to vector<8x8xf32>
    %100 = arith.truncf %99 : vector<8x8xf32> to vector<8x8xbf16>
    %c0_60 = arith.constant 0 : index
    %c0_61 = arith.constant 0 : index
    %101 = vector.load %arg24[%c0_60, %c0_61] : memref<8x32xbf16, #tpu.memory_space<vmem>>, vector<8x8xbf16>
    tpu.vector_store %arg24[%c0_60, %c0_61], %100 {strides = array<i32>} : memref<8x32xbf16, #tpu.memory_space<vmem>>, vector<8x8xbf16>,
    %102 = vector.extract_strided_slice %97 {offsets = [1, 0, 0], sizes = [1, 8, 8], strides = [1, 1, 1]} : vector<4x8x8xf32> to vector<1x8x8xf32>
    %103 = vector.shape_cast %102 : vector<1x8x8xf32> to vector<8x8xf32>
    %104 = arith.truncf %103 : vector<8x8xf32> to vector<8x8xbf16>
    %c0_62 = arith.constant 0 : index
    %c8 = arith.constant 8 : index
    %105 = vector.load %arg24[%c0_62, %c8] : memref<8x32xbf16, #tpu.memory_space<vmem>>, vector<8x8xbf16>
    tpu.vector_store %arg24[%c0_62, %c8], %104 {strides = array<i32>} : memref<8x32xbf16, #tpu.memory_space<vmem>>, vector<8x8xbf16>,
    %106 = vector.extract_strided_slice %97 {offsets = [2, 0, 0], sizes = [1, 8, 8], strides = [1, 1, 1]} : vector<4x8x8xf32> to vector<1x8x8xf32>
    %107 = vector.shape_cast %106 : vector<1x8x8xf32> to vector<8x8xf32>
    %108 = arith.truncf %107 : vector<8x8xf32> to vector<8x8xbf16>
    %c0_63 = arith.constant 0 : index
    %c16 = arith.constant 16 : index
    %109 = vector.load %arg24[%c0_63, %c16] : memref<8x32xbf16, #tpu.memory_space<vmem>>, vector<8x8xbf16>
    tpu.vector_store %arg24[%c0_63, %c16], %108 {strides = array<i32>} : memref<8x32xbf16, #tpu.memory_space<vmem>>, vector<8x8xbf16>,
    %110 = vector.extract_strided_slice %97 {offsets = [3, 0, 0], sizes = [1, 8, 8], strides = [1, 1, 1]} : vector<4x8x8xf32> to vector<1x8x8xf32>
    %111 = vector.shape_cast %110 : vector<1x8x8xf32> to vector<8x8xf32>
    %112 = arith.truncf %111 : vector<8x8xf32> to vector<8x8xbf16>
    %c0_64 = arith.constant 0 : index
    %c24 = arith.constant 24 : index
    %113 = vector.load %arg24[%c0_64, %c24] : memref<8x32xbf16, #tpu.memory_space<vmem>>, vector<8x8xbf16>
    tpu.vector_store %arg24[%c0_64, %c24], %112 {strides = array<i32>} : memref<8x32xbf16, #tpu.memory_space<vmem>>, vector<8x8xbf16>,
    %c0_65 = arith.constant 0 : index
    %c0_66 = arith.constant 0 : index
    %114 = vector.load %arg24[%c0_65, %c0_66] : memref<8x32xbf16, #tpu.memory_space<vmem>>, vector<8x32xbf16>
    %c0_67 = arith.constant 0 : index
    %c0_68 = arith.constant 0 : index
    %c0_69 = arith.constant 0 : index
    %115 = vector.load %arg7[%c0_67, %c0_68, %c0_69] : memref<1x32x32xbf16, #tpu.memory_space<vmem>>, vector<1x32x32xbf16>
    %116 = vector.shape_cast %115 : vector<1x32x32xbf16> to vector<32x32xbf16>
    %cst_70 = arith.constant dense<0.000000e+00> : vector<8x32xf32>
    %117 = tpu.matmul %114, %116, %cst_70 {dimension_numbers = #tpu.dot_dimension_numbers<[1], [0], [0], [1], [0, 0, 1, 1], [], []>} : vector<8x32xbf16>, vector<32x32xbf16>, vector<8x32xf32> -> vector<8x32xf32>
    %c0_71 = arith.constant 0 : index
    %c0_72 = arith.constant 0 : index
    %c0_73 = arith.constant 0 : index
    %118 = vector.load %arg8[%c0_71, %c0_72, %c0_73] : memref<1x1x32xf32, #tpu.memory_space<vmem>>, vector<1x1x32xf32>
    %119 = vector.shape_cast %118 : vector<1x1x32xf32> to vector<1x32xf32>
    %120 = vector.broadcast %119 : vector<1x32xf32> to vector<8x32xf32>
    %121 = arith.addf %117, %120 : vector<8x32xf32>
    %122 = arith.addf %3, %121 : vector<8x32xf32>
    %c0_74 = arith.constant 0 : index
    %c0_75 = arith.constant 0 : index
    %c0_76 = arith.constant 0 : index
    %123 = vector.load %arg9[%c0_74, %c0_75, %c0_76] : memref<1x1x32xf32, #tpu.memory_space<vmem>>, vector<1x1x32xf32>
    %124 = vector.shape_cast %123 : vector<1x1x32xf32> to vector<1x32xf32>
    %c0_77 = arith.constant 0 : index
    %c0_78 = arith.constant 0 : index
    %c0_79 = arith.constant 0 : index
    %125 = vector.load %arg10[%c0_77, %c0_78, %c0_79] : memref<1x1x32xf32, #tpu.memory_space<vmem>>, vector<1x1x32xf32>
    %126 = vector.shape_cast %125 : vector<1x1x32xf32> to vector<1x32xf32>
    %cst_80 = arith.constant dense<0.000000e+00> : vector<8xf32>
    %127 = vector.multi_reduction <add>, %122, %cst_80 [1] : vector<8x32xf32> to vector<8xf32>
    %128 = vector.shape_cast %127 : vector<8xf32> to vector<8x1xf32>
    %cst_81 = arith.constant 3.200000e+01 : f32
    %129 = vector.broadcast %cst_81 : f32 to vector<8x1xf32>
    %130 = arith.divf %128, %129 : vector<8x1xf32>
    %131 = vector.broadcast %130 : vector<8x1xf32> to vector<8x32xf32>
    %132 = arith.subf %122, %131 : vector<8x32xf32>
    %133 = arith.mulf %132, %132 : vector<8x32xf32>
    %cst_82 = arith.constant dense<0.000000e+00> : vector<8xf32>
    %134 = vector.multi_reduction <add>, %133, %cst_82 [1] : vector<8x32xf32> to vector<8xf32>
    %135 = vector.shape_cast %134 : vector<8xf32> to vector<8x1xf32>
    %cst_83 = arith.constant 3.200000e+01 : f32
    %136 = vector.broadcast %cst_83 : f32 to vector<8x1xf32>
    %137 = arith.divf %135, %136 : vector<8x1xf32>
    %138 = vector.broadcast %130 : vector<8x1xf32> to vector<8x32xf32>
    %139 = arith.subf %122, %138 : vector<8x32xf32>
    %cst_84 = arith.constant 9.99999996E-13 : f32
    %140 = vector.broadcast %cst_84 : f32 to vector<8x1xf32>
    %141 = arith.addf %137, %140 : vector<8x1xf32>
    %142 = math.rsqrt %141 : vector<8x1xf32>
    %143 = vector.broadcast %142 : vector<8x1xf32> to vector<8x32xf32>
    %144 = arith.mulf %139, %143 : vector<8x32xf32>
    %145 = vector.broadcast %124 : vector<1x32xf32> to vector<8x32xf32>
    %146 = arith.mulf %144, %145 : vector<8x32xf32>
    %147 = vector.broadcast %126 : vector<1x32xf32> to vector<8x32xf32>
    %148 = arith.addf %146, %147 : vector<8x32xf32>
    %149 = arith.truncf %148 : vector<8x32xf32> to vector<8x32xbf16>
    %c0_85 = arith.constant 0 : index
    %c0_86 = arith.constant 0 : index
    %c0_87 = arith.constant 0 : index
    %150 = vector.load %arg11[%c0_85, %c0_86, %c0_87] : memref<1x32x64xbf16, #tpu.memory_space<vmem>>, vector<1x32x64xbf16>
    %151 = vector.shape_cast %150 : vector<1x32x64xbf16> to vector<32x64xbf16>
    %cst_88 = arith.constant dense<0.000000e+00> : vector<8x64xf32>
    %152 = tpu.matmul %149, %151, %cst_88 {dimension_numbers = #tpu.dot_dimension_numbers<[1], [0], [0], [1], [0, 0, 1, 1], [], []>} : vector<8x32xbf16>, vector<32x64xbf16>, vector<8x64xf32> -> vector<8x64xf32>
    %c0_89 = arith.constant 0 : index
    %c0_90 = arith.constant 0 : index
    %c0_91 = arith.constant 0 : index
    %153 = vector.load %arg12[%c0_89, %c0_90, %c0_91] : memref<1x1x64xf32, #tpu.memory_space<vmem>>, vector<1x1x64xf32>
    %154 = vector.shape_cast %153 : vector<1x1x64xf32> to vector<1x64xf32>
    %155 = vector.broadcast %154 : vector<1x64xf32> to vector<8x64xf32>
    %156 = arith.addf %152, %155 : vector<8x64xf32>
    %cst_92 = arith.constant 5.000000e-01 : f32
    %157 = vector.broadcast %cst_92 : f32 to vector<8x64xf32>
    %158 = arith.mulf %157, %156 : vector<8x64xf32>
    %cst_93 = arith.constant 0.707106769 : f32
    %159 = vector.broadcast %cst_93 : f32 to vector<8x64xf32>
    %160 = arith.mulf %156, %159 : vector<8x64xf32>
    %161 = math.erf %160 : vector<8x64xf32>
    %cst_94 = arith.constant 1.000000e+00 : f32
    %162 = vector.broadcast %cst_94 : f32 to vector<8x64xf32>
    %163 = arith.addf %162, %161 : vector<8x64xf32>
    %164 = arith.mulf %158, %163 : vector<8x64xf32>
    %165 = arith.truncf %164 : vector<8x64xf32> to vector<8x64xbf16>
    %c0_95 = arith.constant 0 : index
    %c0_96 = arith.constant 0 : index
    %c0_97 = arith.constant 0 : index
    %166 = vector.load %arg13[%c0_95, %c0_96, %c0_97] : memref<1x64x32xbf16, #tpu.memory_space<vmem>>, vector<1x64x32xbf16>
    %167 = vector.shape_cast %166 : vector<1x64x32xbf16> to vector<64x32xbf16>
    %cst_98 = arith.constant dense<0.000000e+00> : vector<8x32xf32>
    %168 = tpu.matmul %165, %167, %cst_98 {dimension_numbers = #tpu.dot_dimension_numbers<[1], [0], [0], [1], [0, 0, 1, 1], [], []>} : vector<8x64xbf16>, vector<64x32xbf16>, vector<8x32xf32> -> vector<8x32xf32>
    %c0_99 = arith.constant 0 : index
    %c0_100 = arith.constant 0 : index
    %c0_101 = arith.constant 0 : index
    %169 = vector.load %arg14[%c0_99, %c0_100, %c0_101] : memref<1x1x32xf32, #tpu.memory_space<vmem>>, vector<1x1x32xf32>
    %170 = vector.shape_cast %169 : vector<1x1x32xf32> to vector<1x32xf32>
    %171 = vector.broadcast %170 : vector<1x32xf32> to vector<8x32xf32>
    %172 = arith.addf %168, %171 : vector<8x32xf32>
    %173 = arith.addf %148, %172 : vector<8x32xf32>
    %c0_102 = arith.constant 0 : index
    %c0_103 = arith.constant 0 : index
    %c0_104 = arith.constant 0 : index
    %174 = vector.load %arg15[%c0_102, %c0_103, %c0_104] : memref<1x1x32xf32, #tpu.memory_space<vmem>>, vector<1x1x32xf32>
    %175 = vector.shape_cast %174 : vector<1x1x32xf32> to vector<1x32xf32>
    %c0_105 = arith.constant 0 : index
    %c0_106 = arith.constant 0 : index
    %c0_107 = arith.constant 0 : index
    %176 = vector.load %arg16[%c0_105, %c0_106, %c0_107] : memref<1x1x32xf32, #tpu.memory_space<vmem>>, vector<1x1x32xf32>
    %177 = vector.shape_cast %176 : vector<1x1x32xf32> to vector<1x32xf32>
    %cst_108 = arith.constant dense<0.000000e+00> : vector<8xf32>
    %178 = vector.multi_reduction <add>, %173, %cst_108 [1] : vector<8x32xf32> to vector<8xf32>
    %179 = vector.shape_cast %178 : vector<8xf32> to vector<8x1xf32>
    %cst_109 = arith.constant 3.200000e+01 : f32
    %180 = vector.broadcast %cst_109 : f32 to vector<8x1xf32>
    %181 = arith.divf %179, %180 : vector<8x1xf32>
    %182 = vector.broadcast %181 : vector<8x1xf32> to vector<8x32xf32>
    %183 = arith.subf %173, %182 : vector<8x32xf32>
    %184 = arith.mulf %183, %183 : vector<8x32xf32>
    %cst_110 = arith.constant dense<0.000000e+00> : vector<8xf32>
    %185 = vector.multi_reduction <add>, %184, %cst_110 [1] : vector<8x32xf32> to vector<8xf32>
    %186 = vector.shape_cast %185 : vector<8xf32> to vector<8x1xf32>
    %cst_111 = arith.constant 3.200000e+01 : f32
    %187 = vector.broadcast %cst_111 : f32 to vector<8x1xf32>
    %188 = arith.divf %186, %187 : vector<8x1xf32>
    %189 = vector.broadcast %181 : vector<8x1xf32> to vector<8x32xf32>
    %190 = arith.subf %173, %189 : vector<8x32xf32>
    %cst_112 = arith.constant 9.99999996E-13 : f32
    %191 = vector.broadcast %cst_112 : f32 to vector<8x1xf32>
    %192 = arith.addf %188, %191 : vector<8x1xf32>
    %193 = math.rsqrt %192 : vector<8x1xf32>
    %194 = vector.broadcast %193 : vector<8x1xf32> to vector<8x32xf32>
    %195 = arith.mulf %190, %194 : vector<8x32xf32>
    %196 = vector.broadcast %175 : vector<1x32xf32> to vector<8x32xf32>
    %197 = arith.mulf %195, %196 : vector<8x32xf32>
    %198 = vector.broadcast %177 : vector<1x32xf32> to vector<8x32xf32>
    %199 = arith.addf %197, %198 : vector<8x32xf32>
    %c0_113 = arith.constant 0 : index
    %c0_114 = arith.constant 0 : index
    %200 = vector.load %arg19[%c0_113, %c0_114] : memref<8x32xf32, #tpu.memory_space<vmem>>, vector<8x32xf32>
    tpu.vector_store %arg19[%c0_113, %c0_114], %199 {strides = array<i32>} : memref<8x32xf32, #tpu.memory_space<vmem>>, vector<8x32xf32>,
    %c1_i32 = arith.constant 1 : i32
    %201 = arith.cmpi eq, %arg1, %c1_i32 : i32
    %202 = arith.extui %201 : i1 to i32
    %c0_i32_115 = arith.constant 0 : i32
    %203 = arith.cmpi ne, %202, %c0_i32_115 : i32
    scf.if %203 {
      %204 = vector.extract_strided_slice %199 {offsets = [0, 0], sizes = [1, 32], strides = [1, 1]} : vector<8x32xf32> to vector<1x32xf32>
      %205 = arith.truncf %204 : vector<1x32xf32> to vector<1x32xbf16>
      %c0_116 = arith.constant 0 : index
      %c0_117 = arith.constant 0 : index
      %206 = vector.load %arg17[%c0_116, %c0_117] : memref<32x32xbf16, #tpu.memory_space<vmem>>, vector<32x32xbf16>
      %cst_118 = arith.constant dense<0.000000e+00> : vector<1x32xf32>
      %207 = tpu.matmul %205, %206, %cst_118 {dimension_numbers = #tpu.dot_dimension_numbers<[1], [0], [0], [1], [0, 0, 1, 1], [], []>} : vector<1x32xbf16>, vector<32x32xbf16>, vector<1x32xf32> -> vector<1x32xf32>
      %c0_119 = arith.constant 0 : index
      %c0_120 = arith.constant 0 : index
      %208 = vector.load %arg18[%c0_119, %c0_120] : memref<1x32xf32, #tpu.memory_space<vmem>>, vector<1x32xf32>
      %209 = arith.addf %207, %208 : vector<1x32xf32>
      %210 = math.tanh %209 : vector<1x32xf32>
      %c0_121 = arith.constant 0 : index
      %c0_122 = arith.constant 0 : index
      %c0_123 = arith.constant 0 : index
      %211 = vector.load %arg20[%c0_121, %c0_122, %c0_123] : memref<1x1x32xf32, #tpu.memory_space<vmem>>, vector<1x1x32xf32>
      %212 = vector.shape_cast %211 : vector<1x1x32xf32> to vector<1x32xf32>
      %213 = vector.shape_cast %210 : vector<1x32xf32> to vector<1x1x32xf32>
      tpu.vector_store %arg20[%c0_121, %c0_122, %c0_123], %213 {strides = array<i32>} : memref<1x1x32xf32, #tpu.memory_space<vmem>>, vector<1x1x32xf32>,
    } else {
    }
    return
  }
  func.func @transform_0(%arg0: i32, %arg1: i32) -> (i32, i32) {
    %c0_i32 = arith.constant 0 : i32
    %c0_i32_0 = arith.constant 0 : i32
    return %arg0, %c0_i32 : i32, i32
  }
  func.func @transform_1(%arg0: i32, %arg1: i32) -> (i32, i32, i32) {
    %c0_i32 = arith.constant 0 : i32
    %c0_i32_0 = arith.constant 0 : i32
    %c0_i32_1 = arith.constant 0 : i32
    return %arg0, %c0_i32, %c0_i32_0 : i32, i32, i32
  }
  func.func @transform_2(%arg0: i32, %arg1: i32) -> (i32, i32, i32) {
    %c0_i32 = arith.constant 0 : i32
    %c0_i32_0 = arith.constant 0 : i32
    %c0_i32_1 = arith.constant 0 : i32
    return %arg1, %c0_i32, %c0_i32_0 : i32, i32, i32
  }
  func.func @transform_3(%arg0: i32, %arg1: i32) -> (i32, i32, i32) {
    %c0_i32 = arith.constant 0 : i32
    %c0_i32_0 = arith.constant 0 : i32
    %c0_i32_1 = arith.constant 0 : i32
    return %arg1, %c0_i32, %c0_i32_0 : i32, i32, i32
  }
  func.func @transform_4(%arg0: i32, %arg1: i32) -> (i32, i32, i32) {
    %c0_i32 = arith.constant 0 : i32
    %c0_i32_0 = arith.constant 0 : i32
    %c0_i32_1 = arith.constant 0 : i32
    return %arg1, %c0_i32, %c0_i32_0 : i32, i32, i32
  }
  func.func @transform_5(%arg0: i32, %arg1: i32) -> (i32, i32, i32) {
    %c0_i32 = arith.constant 0 : i32
    %c0_i32_0 = arith.constant 0 : i32
    %c0_i32_1 = arith.constant 0 : i32
    return %arg1, %c0_i32, %c0_i32_0 : i32, i32, i32
  }
  func.func @transform_6(%arg0: i32, %arg1: i32) -> (i32, i32, i32) {
    %c0_i32 = arith.constant 0 : i32
    %c0_i32_0 = arith.constant 0 : i32
    %c0_i32_1 = arith.constant 0 : i32
    return %arg1, %c0_i32, %c0_i32_0 : i32, i32, i32
  }
  func.func @transform_7(%arg0: i32, %arg1: i32) -> (i32, i32, i32) {
    %c0_i32 = arith.constant 0 : i32
    %c0_i32_0 = arith.constant 0 : i32
    %c0_i32_1 = arith.constant 0 : i32
    return %arg1, %c0_i32, %c0_i32_0 : i32, i32, i32
  }
  func.func @transform_8(%arg0: i32, %arg1: i32) -> (i32, i32, i32) {
    %c0_i32 = arith.constant 0 : i32
    %c0_i32_0 = arith.constant 0 : i32
    %c0_i32_1 = arith.constant 0 : i32
    return %arg1, %c0_i32, %c0_i32_0 : i32, i32, i32
  }
  func.func @transform_9(%arg0: i32, %arg1: i32) -> (i32, i32, i32) {
    %c0_i32 = arith.constant 0 : i32
    %c0_i32_0 = arith.constant 0 : i32
    %c0_i32_1 = arith.constant 0 : i32
    return %arg1, %c0_i32, %c0_i32_0 : i32, i32, i32
  }
  func.func @transform_10(%arg0: i32, %arg1: i32) -> (i32, i32, i32) {
    %c0_i32 = arith.constant 0 : i32
    %c0_i32_0 = arith.constant 0 : i32
    %c0_i32_1 = arith.constant 0 : i32
    return %arg1, %c0_i32, %c0_i32_0 : i32, i32, i32
  }
  func.func @transform_11(%arg0: i32, %arg1: i32) -> (i32, i32, i32) {
    %c0_i32 = arith.constant 0 : i32
    %c0_i32_0 = arith.constant 0 : i32
    %c0_i32_1 = arith.constant 0 : i32
    return %arg1, %c0_i32, %c0_i32_0 : i32, i32, i32
  }
  func.func @transform_12(%arg0: i32, %arg1: i32) -> (i32, i32, i32) {
    %c0_i32 = arith.constant 0 : i32
    %c0_i32_0 = arith.constant 0 : i32
    %c0_i32_1 = arith.constant 0 : i32
    return %arg1, %c0_i32, %c0_i32_0 : i32, i32, i32
  }
  func.func @transform_13(%arg0: i32, %arg1: i32) -> (i32, i32, i32) {
    %c0_i32 = arith.constant 0 : i32
    %c0_i32_0 = arith.constant 0 : i32
    %c0_i32_1 = arith.constant 0 : i32
    return %arg1, %c0_i32, %c0_i32_0 : i32, i32, i32
  }
  func.func @transform_14(%arg0: i32, %arg1: i32) -> (i32, i32, i32) {
    %c0_i32 = arith.constant 0 : i32
    %c0_i32_0 = arith.constant 0 : i32
    %c0_i32_1 = arith.constant 0 : i32
    return %arg1, %c0_i32, %c0_i32_0 : i32, i32, i32
  }
  func.func @transform_15(%arg0: i32, %arg1: i32) -> (i32, i32) {
    %c0_i32 = arith.constant 0 : i32
    %c0_i32_0 = arith.constant 0 : i32
    %c0_i32_1 = arith.constant 0 : i32
    return %c0_i32, %c0_i32_0 : i32, i32
  }
  func.func @transform_16(%arg0: i32, %arg1: i32) -> (i32, i32) {
    %c0_i32 = arith.constant 0 : i32
    %c0_i32_0 = arith.constant 0 : i32
    %c0_i32_1 = arith.constant 0 : i32
    return %c0_i32, %c0_i32_0 : i32, i32
  }
  func.func @transform_17(%arg0: i32, %arg1: i32) -> (i32, i32) {
    %c0_i32 = arith.constant 0 : i32
    %c0_i32_0 = arith.constant 0 : i32
    return %arg0, %c0_i32 : i32, i32
  }
  func.func @transform_18(%arg0: i32, %arg1: i32) -> (i32, i32, i32) {
    %c0_i32 = arith.constant 0 : i32
    %c0_i32_0 = arith.constant 0 : i32
    %c0_i32_1 = arith.constant 0 : i32
    return %arg0, %c0_i32, %c0_i32_0 : i32, i32, i32
  }
}

</mosaic_0001>

<bundles_post_ra>
// kernel: bert_wrapper_forward.1
= control target key start
LH: loop header
LB: loop body
LE: loop exit
PB: predicated region body
PF: predicated region fallthrough
CT: control target
= control target key end

     0   :  { %s3009_s0 = inlined_call_operand.vmem [shape: f32[16,32], index: 0, kind: input, shape index: {}]   ;;  %s3010_s1 = inlined_call_operand.vmem [shape: f32[2,1,8], index: 1, kind: input, shape index: {}]   ;;  %s3011_s2 = inlined_call_operand.vmem [shape: bf16[2,32,96], index: 2, kind: input, shape index: {}]   ;;  %s3012_s3 = inlined_call_operand.vmem [shape: f32[2,1,32], index: 3, kind: input, shape index: {}]   ;;  %s3013_s4 = inlined_call_operand.vmem [shape: f32[2,1,32], index: 4, kind: input, shape index: {}]   ;;  %s3014_s5 = inlined_call_operand.vmem [shape: bf16[2,32,32], index: 5, kind: input, shape index: {}]   ;;  %s3015_s6 = inlined_call_operand.vmem [shape: f32[2,1,32], index: 6, kind: input, shape index: {}]   ;;  %s3016_s7 = inlined_call_operand.vmem [shape: f32[2,1,32], index: 7, kind: input, shape index: {}]   ;;  %s3017_s8 = inlined_call_operand.vmem [shape: f32[2,1,32], index: 8, kind: input, shape index: {}]   ;;  %s3018_s9 = inlined_call_operand.vmem [shape: bf16[2,32,64], index: 9, kind: input, shape index: {}]   ;;  %s3019_s10 = inlined_call_operand.vmem [shape: f32[2,1,64], index: 10, kind: input, shape index: {}]   ;;  %s3020_s11 = inlined_call_operand.vmem [shape: bf16[2,64,32], index: 11, kind: input, shape index: {}]   ;;  %s3021_s12 = inlined_call_operand.vmem [shape: f32[2,1,32], index: 12, kind: input, shape index: {}]   ;;  %s3022_s13 = inlined_call_operand.vmem [shape: f32[2,1,32], index: 13, kind: input, shape index: {}]   ;;  %s3023_s14 = inlined_call_operand.vmem [shape: f32[2,1,32], index: 14, kind: input, shape index: {}]   ;;  %s3024_s15 = inlined_call_operand.vmem [shape: bf16[32,32], index: 15, kind: input, shape index: {}]   ;;  %s3025_s16 = inlined_call_operand.vmem [shape: f32[1,32], index: 16, kind: input, shape index: {}]   ;;  %s3026_s17 = inlined_call_operand.hbm [shape: f32[16,32], index: 17, kind: output, shape index: {0}]   ;;  %s3027_s18 = inlined_call_operand.hbm [shape: f32[2,1,32], index: 18, kind: output, shape index: {1}]  }
   0x1   :  { %3045 = sst [smem:[#allocation25_spill]] %s3009_s0 }
   0x2   :  { %3046 = sst [smem:[#allocation26_spill]] %s3010_s1 }
   0x3   :  { %3047 = sst [smem:[#allocation27_spill]] %s3011_s2 }
   0x4   :  { %3048 = sst [smem:[#allocation28_spill]] %s3014_s5 }
   0x5   :  { %3049 = sst [smem:[#allocation29_spill]] %s3015_s6 }
   0x6   :  { %3050 = sst [smem:[#allocation30_spill]] %s3016_s7 }
   0x7   :  { %3051 = sst [smem:[#allocation31_spill]] %s3017_s8 }
   0x8   :  { %3052 = sst [smem:[#allocation32_spill]] %s3018_s9 }
   0x9   :  { %3053 = sst [smem:[#allocation33_spill]] %s3020_s11 }
   0xa   :  { %3054 = sst [smem:[#allocation34_spill]] %s3021_s12 }
   0xb   :  { %3055 = sst [smem:[#allocation35_spill]] %s3022_s13 }
   0xc   :  { %3056 = sst [smem:[#allocation36_spill]] %s3023_s14 }
   0xd   :  { %3057 = sst [smem:[#allocation37_spill]] %s3024_s15 }
   0xe   :  { %3058 = sst [smem:[#allocation38_spill]] %s3025_s16 }
   0xf   :  { %3059 = sst [smem:[#allocation39_spill]] %s3026_s17 }
  0x10   :  { %3060 = sst [smem:[#allocation40_spill]] %s3027_s18 }
  0x11   :  { %24 = vsyncpa [#allocation7], 0 }
  0x12   :  { %26 = vsyncpa [#allocation7 + $0x1], 0 }
  0x13   :  { %27 = vsyncpa [#allocation9], 0 }
  0x14   :  { %29 = vsyncpa [#allocation9 + $0x1], 0  ;;  %s2621_s27 = smov 0   ;;  %s2623_s28 = smov 0  }
  0x15   :  { %s2625_s29 = smov 0   ;;  %s2627_s30 = smov 0  }
  0x16   :  { %s2629_s0 = smov 0   ;;  %s2631_s19 = smov 0  }
  0x17   :  { %s2633_s1 = smov 0   ;;  %s2635_s20 = smov 0  }
  0x18 LB: > { %3061 = sst [smem:[#allocation12_spill]] %s2476_s27  ;;  %s2054_s21 = sadd.s32 4294967295, %s2504_s20   ;;  %s2504_s20 = sphi %s2635_s20, %s35_s20   ;;  %s2500_s1 = sphi %s2633_s1, %s3120_s1   ;;  %s2496_s19 = sphi %s2631_s19, %s3119_s19   ;;  %s2492_s0 = sphi %s2629_s0, %s3118_s0   ;;  %s2488_s30 = sphi %s2627_s30, %s3117_s30   ;;  %s2484_s29 = sphi %s2625_s29, %s3116_s29   ;;  %s2480_s28 = sphi %s2623_s28, %s3115_s28   ;;  %s2476_s27 = sphi %s2621_s27, %s3114_s27  }
  0x19   : > { %3062 = sst [smem:[#allocation13_spill]] %s2480_s28  ;;  %s2055_s22 = sadd.s32 4294967294, %s2504_s20  }
  0x1a   : > { %3063 = sst [smem:[#allocation14_spill]] %s2484_s29  ;;  %s44_s2 = sadd.s32 1, %s2496_s19 }
  0x1b   : > { %3064 = sst [smem:[#allocation15_spill]] %s2488_s30  ;;  %p45_p0 = scmp.ge.s32.totalorder %s44_s2, 2 }
  0x1c   : > { %3065 = sst [smem:[#allocation16_spill]] %s2492_s0  ;;  %s47_s23 = sadd.s32 1, %s2500_s1 }
  0x1d   : > { %3066 = sst [smem:[#allocation17_spill]] %s2496_s19  ;;  %p496_p1 = scmp.ne.s32.totalorder %s2484_s29, %s2480_s28 }
  0x1e   : > { %3067 = sst [smem:[#allocation18_spill]] %s2500_s1  ;;  %p497_p2 = scmp.eq.s32.totalorder %s2054_s21, 3 }
  0x1f   : > { %3068 = sst [smem:[#allocation19_spill]] %s2504_s20  ;;  %s3122_s2 = smov (%p45_p0, %s44_s2), 0 }
  0x20   : > { %3069 = sst [smem:[#allocation20_spill]] %s3122_s2  ;;  %s3124_s23 = smov (!%p45_p0, %s47_s23), %s2500_s1 }
  0x21   : > { %p2670_p3 = por %p497_p2, %p496_p1  ;;  %p502_p4 = scmp.ne.s32.totalorder %s2480_s28, %s2476_s27 }
  0x22   : > { %p49_p5 = scmp.ge.s32.totalorder %s3124_s23, 2  ;;  %p503_p6 = scmp.eq.s32.totalorder %s2055_s22, 3 }
  0x23   : > { %s3070_s24 = scalar_select %p2670_p3, 1, 0 }
  0x24   : > { %p2058_p7 = scmp.ge.s32.totalorder %s2504_s20, 1  ;;  %p652_p8 = scmp.lt.s32.totalorder %s2504_s20, 5 }
  0x25   : > { %3071 = sst [smem:[#allocation21_spill]] %s3070_s24  ;;  %s3126_s23 = smov (%p49_p5, %s3124_s23), 0 }
  0x26   : > { %3072 = sst [smem:[#allocation22_spill]] %s3126_s23  ;;  %p2680_p9 = por %p503_p6, %p502_p4 }
  0x27   : > { %p653_p10 = pnand %p2058_p7, %p652_p8  ;;  %s483_s26 = ssub.s32 %s2500_s1, %s3126_s23 }
  0x28   : > { %s3073_s25 = scalar_select %p2680_p9, 1, 0 }
  0x29   : > { %s486_s21 = sadd.s32 1, %s2484_s29  ;;  %p484_p11 = scmp.eq.s32.totalorder %s483_s26, 0 }
  0x2a   : > { %3074 = sst [smem:[#allocation23_spill]] %s3073_s25  ;;  %656 = sbr.rel (%p653_p10) target bundleno = 2747 (0xabb), region = 88 }
  0x2b   : > { %s2688_s2 = scalar_select %p484_p11, %s2484_s29, %s486_s21  }
  0x2c   : > { %s2691_s22 = sand.u32 (!%p653_p10), 1, %s2480_s28   ;;  %p759_p12 = scmp.lt.s32.totalorder (!%p653_p10), %s2492_s0, 1 }
  0x2d   : > { %3075 = sst [smem:[#allocation24_spill]] %s2688_s2  ;;  %s2059_s19 = sshll.u32 (!%p653_p10), %s2691_s22, 3 }
  0x2e   : > { %p766_p13 = scmp.lt.s32.totalorder (!%p653_p10), %s2488_s30, 1  ;;  %s3077_s20 = sld [smem:[#allocation25_spill]] (!%p653_p10) }
  0x2f   : > { %s2697_s27 = scalar_select %p759_p12, %s2492_s0, 1 }
  0x30   : > { %s2700_s23 = scalar_select %p766_p13, %s2488_s30, 1 }
  0x31   : > { %s2060_s26 = sshll.u32 %s2697_s27, 3  ;;  %s3078_s16 = sld [smem:[#allocation27_spill]] }
  0x32   : > { %s2117_s17 = sshll.u32 %s2700_s23, 4  ;;  %s3079_s5 = sld [smem:[#allocation28_spill]] }
  0x33   : > { %s3083_s9 = sld [smem:[#allocation32_spill]]  ;;  %s2766_s2 = scalar_lea.vmem [#allocation6], %s2059_s19 }
  0x34   : > { %s762_s18 = scalar_lea.vmem %s3077_s20, %s2060_s26  ;;  %s3084_s26 = sld [smem:[#allocation33_spill]] }
  0x35   : > { %s3086_s8 = sld [smem:[#allocation35_spill]]  ;;  %s758_s21 = scalar_lea.vmem [#allocation8], %s2691_s22 }
  0x36   : > { %s3088_s1 = sld [smem:[#allocation15_spill]] }
  0x37   : > { %s770_s15 = scalar_lea.vmem %s3078_s16, %s2117_s17  ;;  %s3085_s16 = sld [smem:[#allocation34_spill]] }
  0x38   : > { %s2725_s28 = scalar_lea.vmem %s3079_s5, %s2117_s17  ;;  %s2120_s5 = sshll.u32 %s2700_s23, 5 }
  0x39   : > { %s2742_s12 = scalar_lea.vmem %s3083_s9, %s2117_s17  ;;  %s3087_s9 = sld [smem:[#allocation36_spill]] }
  0x3a   : > { %s2752_s6 = scalar_lea.vmem %s3084_s26, %s2120_s5 }
  0x3b   : > { %s809_s13 = scalar_lea.vmem %s3086_s8, %s2700_s23 }
  0x3c   : > { %p2069_p0 = scmp.ne.s32.totalorder %s3088_s1, 0 }
  0x3d   : > { %s806_s29 = scalar_lea.vmem %s3085_s16, %s2700_s23 }
  0x3e   : > { %817 = sbr.rel (%p2069_p0) target bundleno = 69 (0x45), region = 92 }
  0x3f   : > { %s812_s7 = scalar_lea.vmem %s3087_s9, %s2700_s23 }
  0x43   : > { %v818_v0 = vld [vmem:[%s762_s18] sm:$0xff]  ;;  %vm819_vm0 = vcmask 261120  }
  0x44   : > { %820 = vst.msk [vmem:[%s2766_s2] sm:$0xff] %vm819_vm0, %v818_v0 }
  0x45 PF: > { %v2346_v1 = vld [vmem:[%s770_s15 + $0x8] sm:$0xff]   ;;  %v2506_v2 = vmov 0.0   ;;  %v2347_v3 = vld [vmem:[%s770_s15] sm:$0xff]   ;;  %vm2507_vm1 = vmmov 0   ;;  %vm839_vm2 = vcmask 261120   ;;  %s3089_s9 = scalar_lea.vmem %s3012_s3, %s2700_s23  ;;  %vm902_vm3 = vcmask 60416   ;;  %s3092_s17 = scalar_lea.vmem %s3013_s4, %s2700_s23 }
  0x46   : > { %2160 = vmatprep.subr.bf16.mxu0 %v2506_v2  ;;  %2168 = vmatprep.subr.bf16.mxu1 %v2506_v2  ;;  %v2073_v6 = vld [vmem:[%s3089_s9] ss:$0 sm:$0xff]  ;;  %s2508_s15 = smov 80   ;;  %s2509_s18 = smov 96   ;;  %vm983_vm4 = vcmask 64512   ;;  %vm1223_vm5 = vcmask 1043456  }
  0x47   : > { %2161 = vmatpush3.bf16.msra.mxu0 %v2346_v1  ;;  %2164 = vmatprep.mubr.msk.bf16.mxu0 %vm2507_vm1, %v2506_v2  ;;  %s2510_s19 = smov 88   ;;  %s2511_s1 = smov 120   ;;  %v2074_v58 = vld [vmem:[%s3092_s17] ss:$0 sm:$0xff]  ;;  %vm1414_vm6 = vcmask 126016   ;;  %vm1423_vm7 = vcmask 191616  }
  0x48   : > { %2162 = vmatprep.subr.bf16.mxu0 %v2506_v2  ;;  %2170 = vmatprep.mubr.msk.bf16.mxu1 %vm2507_vm1, %v2506_v2  ;;  %s2512_s26 = smov 72   ;;  %s2513_s16 = smov 112   ;;  %vm1432_vm8 = vcmask 257216   ;;  %vm1644_vm9 = vcmask 523264  }
  0x49   : > { %s2514_s30 = smov 104   ;;  %s3090_s0 = sld [smem:[#allocation26_spill]] }
  0x4a   : > { %s2515_s11 = smov 64   ;;  %s2516_s5 = smov 56  }
  0x4b   : > { %v2776_v4 = vld [vmem:[%s2766_s2] sm:$0xff]  ;;  %2163 = vmatpush3.bf16.msra.mxu0 %v2347_v3  ;;  %s2517_s8 = smov 48   ;;  %s2518_s9 = smov 40  }
  0x4c   : > { %v822_v5 = vpack.c.bf16 %v2776_v4, %v2776_v4  ;;  %2174 = vmatprep.subr.bf16.mxu0 %v2506_v2  ;;  %s3095_s25 = sld [smem:[#allocation30_spill]] }
  0x4e   : > { %2165 = vmatmul.mubr.msk.bf16.vlgmr.msra.gmra.mxu0 %vm839_vm2, %v822_v5 }
  0x4f   : > { %2176 = vmatprep.mubr.msk.bf16.mxu0 %vm2507_vm1, %v2506_v2  ;;  %s3091_s24 = scalar_lea.vmem %s3090_s0, %s2697_s27 }
  0x50   : > { %v2078_v33 = vld [vmem:[%s3091_s24] ss:$0 sm:$0xff] }
  0x52   : > { %s3096_s0 = scalar_lea.vmem %s3095_s25, %s2700_s23 }
 0x10e   : > { %v2792_v7 = vpop.f32.mrf.mxu0 }
 0x10f   : > { %v890_v8 = vadd.f32 %v2073_v6, %v2792_v7  ;;  %v2121_v9 = vpack.c.bf16 %v2792_v7, %v2792_v7 }
 0x110   : > { %v2166_v10 = vpop.f32.mrf.mxu0 }
 0x111   : > { %v901_v11 = vpack.c.bf16 %v890_v8, %v890_v8  ;;  %943 = vrot.lane.b32.xlu1 %v2121_v9, %s2508_s15  ;;  %908 = vrot.lane.b32.xlu0 %v2121_v9, %s2509_s18  ;;  %s2519_s15 = smov 8   ;;  %s2520_s18 = smov 24  }
 0x112   : > { %v880_v12 = vpop.f32.mrf.mxu0 }
 0x113   : > { %903 = vst.msk [vmem:[#allocation2] sm:$0xf] %vm902_vm3, %v901_v11 }
 0x114   : > { %v2167_v13 = vpop.f32.mrf.mxu0 }
 0x115   : > { %928 = vrot.lane.b32.xlu0 %v2121_v9, %s2510_s19  ;;  %923 = vrot.lane.b32.xlu1 %v901_v11, %s2511_s1 }
 0x119   : > { %958 = vrot.lane.b32.xlu0 %v2121_v9, %s2512_s26  ;;  %938 = vrot.lane.b32.xlu1 %v901_v11, %s2513_s16  ;;  %s3093_s26 = sld [smem:[#allocation29_spill]] }
 0x11a   : > { %v968_v26 = vld [vmem:[#allocation2] sm:$0xf] }
 0x11d   : > { %953 = vrot.lane.b32.xlu0 %v901_v11, %s2514_s30 }
 0x11f   : > { %s3094_s16 = scalar_lea.vmem %s3093_s26, %s2700_s23  ;;  %s3103_s26 = sld [smem:[#allocation15_spill]] }
 0x125   : > { %p2108_p1 = scmp.ne.s32.totalorder %s3103_s26, 1 }
 0x126   : > { %s3104_s20 = sld [smem:[#allocation37_spill]] (!%p2108_p1) }
 0x127   : > { %s3106_s24 = sld [smem:[#allocation38_spill]] (!%p2108_p1) }
 0x12c   : > { %s3105_s25 = smov (!%p2108_p1), %s3104_s20 }
 0x183   : > { %v944_v14 = vpop.permute.xlu1 %943  ;;  %v909_v15 = vpop.permute.xlu0 %908 }
 0x184   : > { %947 = vst.msk [vmem:[#allocation3 + $0x8] sm:$0xf] %vm902_vm3, %v944_v14  ;;  %911 = vst.msk [vmem:[#allocation3] sm:$0xf] %vm902_vm3, %v909_v15 }
 0x187   : > { %v929_v16 = vpop.permute.xlu0 %928  ;;  %v924_v17 = vpop.permute.xlu1 %923 }
 0x188   : > { %932 = vst.msk [vmem:[#allocation3 + $0x4] sm:$0xf] %vm902_vm3, %v929_v16  ;;  %927 = vst.msk [vmem:[#allocation2 + $0x4] sm:$0xf] %vm902_vm3, %v924_v17 }
 0x18b   : > { %v959_v18 = vpop.permute.xlu0 %958  ;;  %v939_v19 = vpop.permute.xlu1 %938  ;;  %v972_v20 = vld [vmem:[#allocation3] sm:$0xf]  ;;  %v974_v25 = vld [vmem:[#allocation3 + $0x8] sm:$0xf] }
 0x18c   : > { %962 = vst.msk [vmem:[#allocation3 + $0xc] sm:$0xf] %vm902_vm3, %v959_v18  ;;  %942 = vst.msk [vmem:[#allocation2 + $0x8] sm:$0xf] %vm902_vm3, %v939_v19  ;;  %v988_v21 = vsel %vm983_vm4, %v972_v20, 0  ;;  %v1080_v27 = vsel %vm983_vm4, %v974_v25, 0 }
 0x18d   : > { %2169 = vmatpush3.bf16.xpose.msra.mxu1 %v988_v21 }
 0x18e   : > { %2180 = vmatprep.subr.bf16.mxu1 %v2506_v2 }
 0x18f   : > { %v954_v22 = vpop.permute.xlu0 %953  ;;  %v973_v23 = vld [vmem:[#allocation3 + $0x4] sm:$0xf]  ;;  %v969_v29 = vld [vmem:[#allocation2 + $0x4] sm:$0xf] }
 0x190   : > { %957 = vst.msk [vmem:[#allocation2 + $0xc] sm:$0xf] %vm902_vm3, %v954_v22  ;;  %v1034_v24 = vsel %vm983_vm4, %v973_v23, 0 }
 0x191   : > { %2175 = vmatpush3.bf16.xpose.msra.mxu0 %v1034_v24 }
 0x192   : > { %2186 = vmatprep.subr.bf16.mxu0 %v2506_v2 }
 0x193   : > { %v975_v28 = vld [vmem:[#allocation3 + $0xc] sm:$0xf]  ;;  %v970_v31 = vld [vmem:[#allocation2 + $0x8] sm:$0xf] }
 0x194   : > { %2171 = vmatmul.mubr.msk.bf16.vlgmr.msra.gmra.mxu1 %vm983_vm4, %v968_v26  ;;  %v1126_v30 = vsel %vm983_vm4, %v975_v28, 0 }
 0x195   : > { %2181 = vmatpush3.bf16.xpose.msra.mxu1 %v1080_v27  ;;  %2182 = vmatprep.mubr.msk.bf16.mxu1 %vm2507_vm1, %v2506_v2 }
 0x196   : > { %2192 = vmatprep.subr.bf16.mxu1 %v2506_v2 }
 0x197   : > { %v971_v32 = vld [vmem:[#allocation2 + $0xc] sm:$0xf] }
 0x198   : > { %2177 = vmatmul.mubr.msk.bf16.vlgmr.msra.gmra.mxu0 %vm983_vm4, %v969_v29 }
 0x199   : > { %2187 = vmatpush3.bf16.xpose.msra.mxu0 %v1126_v30  ;;  %2188 = vmatprep.mubr.msk.bf16.mxu0 %vm2507_vm1, %v2506_v2 }
 0x19a   : > { %2198 = vmatprep.subr.bf16.mxu0 %v2506_v2 }
 0x19c   : > { %2183 = vmatmul.mubr.msk.bf16.vlgmr.msra.gmra.mxu1 %vm983_vm4, %v970_v31 }
 0x19d   : > { %2194 = vmatprep.mubr.msk.bf16.mxu1 %vm2507_vm1, %v2506_v2 }
 0x1a0   : > { %2189 = vmatmul.mubr.msk.bf16.vlgmr.msra.gmra.mxu0 %vm983_vm4, %v971_v32 }
 0x1a1   : > { %2200 = vmatprep.mubr.msk.bf16.mxu0 %vm2507_vm1, %v2506_v2 }
 0x254   : > { %v1024_v34 = vpop.f32.mrf.mxu1 }
 0x255   : > { %v1025_v35 = vadd.f32 %v2078_v33, %v1024_v34 }
 0x256   : > { %v2172_v36 = vpop.f32.mrf.mxu1 }
 0x257   : > { %v1168_v37 = vsel %vm983_vm4, %v1025_v35, -inf }
 0x258   : > { %1169 = vmax.xlane.f32.xlu1 %v1168_v37  ;;  %v1027_v38 = vpop.f32.mrf.mxu1  ;;  %v1070_v39 = vpop.f32.mrf.mxu0 }
 0x259   : > { %v1071_v40 = vadd.f32 %v2078_v33, %v1070_v39 }
 0x25a   : > { %v2173_v41 = vpop.f32.mrf.mxu1  ;;  %v2178_v42 = vpop.f32.mrf.mxu0 }
 0x25b   : > { %v1171_v43 = vsel %vm983_vm4, %v1071_v40, -inf }
 0x25c   : > { %v1116_v44 = vpop.f32.mrf.mxu1  ;;  %1172 = vmax.xlane.f32.xlu0 %v1171_v43  ;;  %v1073_v45 = vpop.f32.mrf.mxu0 }
 0x25d   : > { %v1117_v46 = vadd.f32 %v2078_v33, %v1116_v44 }
 0x25e   : > { %v2179_v47 = vpop.f32.mrf.mxu0  ;;  %v2184_v48 = vpop.f32.mrf.mxu1 }
 0x25f   : > { %v1174_v49 = vsel %vm983_vm4, %v1117_v46, -inf }
 0x260   : > { %v1119_v50 = vpop.f32.mrf.mxu1  ;;  %1175 = vmax.xlane.f32.xlu0 %v1174_v49  ;;  %v1162_v51 = vpop.f32.mrf.mxu0 }
 0x261   : > { %v1163_v52 = vadd.f32 %v2078_v33, %v1162_v51 }
 0x262   : > { %v2185_v53 = vpop.f32.mrf.mxu1  ;;  %v2190_v54 = vpop.f32.mrf.mxu0 }
 0x263   : > { %v1177_v55 = vsel %vm983_vm4, %v1163_v52, -inf }
 0x264   : > { %1178 = vmax.xlane.f32.xlu1 %v1177_v55  ;;  %v1165_v56 = vpop.f32.mrf.mxu0 }
 0x265   : > { %v2349_v56 = vld [vmem:[%s2725_s28] sm:$0xff]  }
 0x266   : > { %v2191_v57 = vpop.f32.mrf.mxu0 }
 0x276   : > { %897 = vrot.lane.b32.xlu0 %v2074_v58, %s2515_s11 }
 0x2e1   : > { %v1170_v59 = vpop.xlane.xlu1 %1169 }
 0x2e2   : > { %v1180_v60 = vsub.f32 %v1025_v35, %v1170_v59 }
 0x2e4   : > { %v1184_v61 = vmul.f32 1.442695, %v1180_v60 }
 0x2e5   : > { %v1173_v62 = vpop.xlane.xlu0 %1172 }
 0x2e6   : > { %2356 = vpow2.f32 %v1184_v61  ;;  %v1181_v63 = vsub.f32 %v1071_v40, %v1173_v62 }
 0x2e8   : > { %v1186_v0 = vmul.f32 1.442695, %v1181_v63 }
 0x2e9   : > { %v1176_v1 = vpop.xlane.xlu0 %1175 }
 0x2ea   : > { %2358 = vpow2.f32 %v1186_v0  ;;  %v1182_v3 = vsub.f32 %v1117_v46, %v1176_v1 }
 0x2ec   : > { %v1188_v5 = vmul.f32 1.442695, %v1182_v3 }
 0x2ed   : > { %v898_v6 = vpop.permute.xlu0 %897  ;;  %v1179_v8 = vpop.xlane.xlu1 %1178 }
 0x2ee   : > { %2360 = vpow2.f32 %v1188_v5  ;;  %v900_v9 = vadd.f32 %v898_v6, %v2792_v7  ;;  %v1183_v10 = vsub.f32 %v1163_v52, %v1179_v8  ;;  %v2348_v52 = vld [vmem:[%s2725_s28 + $0x8] sm:$0xff]   ;;  %s2521_s28 = smov 16  }
 0x2f0   : > { %v2122_v11 = vpack.c.bf16 %v900_v9, %v900_v9  ;;  %v1190_v12 = vmul.f32 1.442695, %v1183_v10 }
 0x2f2   : > { %2362 = vpow2.f32 %v1190_v12  ;;  %933 = vrot.lane.b32.xlu0 %v2122_v11, %s2516_s5  ;;  %s3099_s5 = scalar_lea.vmem %s3019_s10, %s2700_s23 }
 0x2f3   : > { %v2357_v13 = vpop.eup %2356 }
 0x2f4   : > { %v1192_v14 = vsel %vm983_vm4, %v2357_v13, 0.0 }
 0x2f5   : > { %1193 = vadd.xlane.f32.xlu1 %v1192_v14 }
 0x2f6   : > { %948 = vrot.lane.b32.xlu0 %v2122_v11, %s2517_s8 }
 0x2f7   : > { %v2359_v15 = vpop.eup %2358 }
 0x2f8   : > { %v1195_v16 = vsel %vm983_vm4, %v2359_v15, 0.0 }
 0x2f9   : > { %1196 = vadd.xlane.f32.xlu1 %v1195_v16 }
 0x2fa   : > { %963 = vrot.lane.b32.xlu0 %v2122_v11, %s2518_s9 }
 0x2fb   : > { %v2361_v17 = vpop.eup %2360 }
 0x2fc   : > { %v1198_v7 = vsel %vm983_vm4, %v2361_v17, 0.0 }
 0x2fd   : > { %1199 = vadd.xlane.f32.xlu1 %v1198_v7 }
 0x2ff   : > { %v2363_v18 = vpop.eup %2362 }
 0x300   : > { %v1201_v19 = vsel %vm983_vm4, %v2363_v18, 0.0 }
 0x301   : > { %1202 = vadd.xlane.f32.xlu1 %v1201_v19 }
 0x312   : > { %916 = vrot.lane.b32.xlu1 %v2122_v11, %s2515_s11 }
 0x364   : > { %v934_v20 = vpop.permute.xlu0 %933 }
 0x365   : > { %937 = vst.msk [vmem:[#allocation4 + $0x4] sm:$0xf] %vm902_vm3, %v934_v20 }
 0x368   : > { %v949_v21 = vpop.permute.xlu0 %948 }
 0x369   : > { %952 = vst.msk [vmem:[#allocation4 + $0x8] sm:$0xf] %vm902_vm3, %v949_v21 }
 0x36c   : > { %v964_v22 = vpop.permute.xlu0 %963  ;;  %v1217_v23 = vld [vmem:[#allocation4 + $0x4] sm:$0xf] }
 0x36d   : > { %967 = vst.msk [vmem:[#allocation4 + $0xc] sm:$0xf] %vm902_vm3, %v964_v22  ;;  %v1271_v24 = vsel %vm1223_vm5, %v1217_v23, 0 }
 0x36e   : > { %2199 = vmatpush3.bf16.msra.mxu0 %v1271_v24 }
 0x36f   : > { %2210 = vmatprep.subr.bf16.mxu0 %v2506_v2 }
 0x370   : > { %v1218_v40 = vld [vmem:[#allocation4 + $0x8] sm:$0xf] }
 0x371   : > { %v1317_v44 = vsel %vm1223_vm5, %v1218_v40, 0  ;;  %v2096_v40 = vld [vmem:[%s3099_s5] ss:$0 sm:$0xff] }
 0x374   : > { %v1219_v33 = vld [vmem:[#allocation4 + $0xc] sm:$0xf] }
 0x375   : > { %v1363_v35 = vsel %vm1223_vm5, %v1219_v33, 0 }
 0x37e   : > { %v1194_v25 = vpop.xlane.xlu1 %1193 }
 0x382   : > { %v1197_v26 = vpop.xlane.xlu1 %1196 }
 0x383   : > { %2364 = vrcp.f32 %v1197_v26  ;;  %v2351_v26 = vld [vmem:[%s2742_s12] sm:$0xff]  }
 0x384   : > { %2366 = vrcp.f32 %v1194_v25  ;;  %v2350_v25 = vld [vmem:[%s2742_s12 + $0x8] sm:$0xff]   ;;  %s3097_s12 = sld [smem:[#allocation31_spill]] }
 0x386   : > { %v1200_v27 = vpop.xlane.xlu1 %1199 }
 0x38a   : > { %v1203_v28 = vpop.xlane.xlu1 %1202  ;;  %s3098_s14 = scalar_lea.vmem %s3097_s12, %s2700_s23 }
 0x38b   : > { %2368 = vrcp.f32 %v1203_v28 }
 0x38c   : > { %2370 = vrcp.f32 %v1200_v27 }
 0x38e   : > { %v917_v29 = vpop.permute.xlu1 %916 }
 0x38f   : > { %919 = vst.msk [vmem:[#allocation4] sm:$0xf] %vm902_vm3, %v917_v29 }
 0x390   : > { %v2365_v30 = vpop.eup %2364 }
 0x391   : > { %v1209_v31 = vmul.f32 %v2365_v30, %v2359_v15  ;;  %v2367_v32 = vpop.eup %2366  ;;  %v2094_v30 = vld [vmem:[%s3096_s0] ss:$0 sm:$0xff] }
 0x392   : > { %v1208_v36 = vmul.f32 %v2367_v32, %v2357_v13  ;;  %v2090_v13 = vld [vmem:[%s3094_s16] ss:$0 sm:$0xff] }
 0x393   : > { %v1213_v34 = vpack.c.bf16 %v1209_v31, %v1209_v31  ;;  %v2095_v32 = vld [vmem:[%s3098_s14] ss:$0 sm:$0xff] }
 0x394   : > { %v1212_v41 = vpack.c.bf16 %v1208_v36, %v1208_v36  ;;  %v2352_v36 = vld [vmem:[%s2752_s6 + $0x18] sm:$0xff]  }
 0x395   : > { %2201 = vmatmul.mubr.msk.bf16.vlgmr.msra.gmra.mxu0 %vm983_vm4, %v1213_v34 }
 0x396   : > { %2211 = vmatpush3.bf16.msra.mxu0 %v1363_v35  ;;  %v1216_v37 = vld [vmem:[#allocation4] sm:$0xf]  ;;  %2212 = vmatprep.mubr.msk.bf16.mxu0 %vm2507_vm1, %v2506_v2 }
 0x397   : > { %v1225_v38 = vsel %vm1223_vm5, %v1216_v37, 0  ;;  %2224 = vmatprep.subr.bf16.mxu0 %v2506_v2  ;;  %v2353_v37 = vld [vmem:[%s2752_s6 + $0x10] sm:$0xff]  }
 0x398   : > { %v2369_v39 = vpop.eup %2368  ;;  %2193 = vmatpush3.bf16.msra.mxu1 %v1225_v38  ;;  %v2354_v38 = vld [vmem:[%s2752_s6 + $0x8] sm:$0xff]  }
 0x399   : > { %2204 = vmatprep.subr.bf16.mxu1 %v2506_v2  ;;  %v1211_v42 = vmul.f32 %v2369_v39, %v2363_v18  ;;  %v2371_v43 = vpop.eup %2370  ;;  %v2355_v39 = vld [vmem:[%s2752_s6] sm:$0xff]  }
 0x39a   : > { %v1210_v46 = vmul.f32 %v2371_v43, %v2361_v17 }
 0x39b   : > { %2195 = vmatmul.mubr.msk.bf16.vlgmr.msra.gmra.mxu1 %vm983_vm4, %v1212_v41  ;;  %v1215_v45 = vpack.c.bf16 %v1211_v42, %v1211_v42 }
 0x39c   : > { %2205 = vmatpush3.bf16.msra.mxu1 %v1317_v44  ;;  %2206 = vmatprep.mubr.msk.bf16.mxu1 %vm2507_vm1, %v2506_v2  ;;  %v1214_v47 = vpack.c.bf16 %v1210_v46, %v1210_v46 }
 0x39d   : > { %2213 = vmatmul.mubr.msk.bf16.vlgmr.msra.gmra.mxu0 %vm983_vm4, %v1215_v45  ;;  %2216 = vmatprep.subr.bf16.mxu1 %v2506_v2 }
 0x39e   : > { %2228 = vmatprep.mubr.msk.bf16.mxu0 %vm2507_vm1, %v2506_v2  ;;  %2225 = vmatpush3.bf16.msra.mxu0 %v2350_v25 }
 0x39f   : > { %2226 = vmatprep.subr.bf16.mxu0 %v2506_v2 }
 0x3a2   : > { %2227 = vmatpush3.bf16.msra.mxu0 %v2351_v26 }
 0x3a3   : > { %2207 = vmatmul.mubr.msk.bf16.vlgmr.msra.gmra.mxu1 %vm983_vm4, %v1214_v47 }
 0x3a4   : > { %2220 = vmatprep.mubr.msk.bf16.mxu1 %vm2507_vm1, %v2506_v2  ;;  %2217 = vmatpush3.bf16.msra.mxu1 %v2348_v52 }
 0x3a5   : > { %2218 = vmatprep.subr.bf16.mxu1 %v2506_v2 }
 0x3a8   : > { %2219 = vmatpush3.bf16.msra.mxu1 %v2349_v56 }
 0x3a9   : > { %2232 = vmatprep.subr.bf16.mxu1 %v2506_v2 }
 0x455   : > { %v1307_v48 = vpop.f32.mrf.mxu0 }
 0x456   : > { %v2124_v49 = vpack.c.bf16 %v1307_v48, %v1307_v48 }
 0x457   : > { %v2202_v50 = vpop.f32.mrf.mxu0 }
 0x458   : > { %1411 = vrot.lane.b32.xlu0 %v2124_v49, %s2519_s15 }
 0x459   : > { %v1310_v51 = vpop.f32.mrf.mxu0 }
 0x45a   : > { %v2100_v51 = vld [vmem:[%s806_s29] ss:$0 sm:$0xff] }
 0x45b   : > { %v1261_v53 = vpop.f32.mrf.mxu1  ;;  %v2203_v54 = vpop.f32.mrf.mxu0 }
 0x45c   : > { %v1405_v55 = vpack.c.bf16 %v1261_v53, %v1261_v53 }
 0x45d   : > { %v2196_v57 = vpop.f32.mrf.mxu1  ;;  %v1399_v58 = vpop.f32.mrf.mxu0 }
 0x45e   : > { %1406 = vst.msk [vmem:[#allocation5] sm:$0xf] %vm902_vm3, %v1405_v55  ;;  %v2126_v59 = vpack.c.bf16 %v1399_v58, %v1399_v58 }
 0x45f   : > { %v1264_v60 = vpop.f32.mrf.mxu1  ;;  %v2214_v61 = vpop.f32.mrf.mxu0 }
 0x460   : > { %1429 = vrot.lane.b32.xlu0 %v2126_v59, %s2520_s18 }
 0x461   : > { %v2197_v62 = vpop.f32.mrf.mxu1  ;;  %v1402_v63 = vpop.f32.mrf.mxu0 }
 0x463   : > { %v1353_v0 = vpop.f32.mrf.mxu1  ;;  %v2215_v1 = vpop.f32.mrf.mxu0 }
 0x464   : > { %v2125_v3 = vpack.c.bf16 %v1353_v0, %v1353_v0 }
 0x465   : > { %v2208_v5 = vpop.f32.mrf.mxu1 }
 0x466   : > { %1420 = vrot.lane.b32.xlu1 %v2125_v3, %s2521_s28 }
 0x467   : > { %v1356_v6 = vpop.f32.mrf.mxu1 }
 0x468   : > { %v2106_v6 = vld [vmem:[%s809_s13] ss:$0 sm:$0xff] }
 0x469   : > { %v2209_v8 = vpop.f32.mrf.mxu1 }
 0x4ca   : > { %v1412_v9 = vpop.permute.xlu0 %1411 }
 0x4cb   : > { %1415 = vst.msk [vmem:[#allocation5] sm:$0xf] %vm1414_vm6, %v1412_v9  ;;  %v2107_v9 = vld [vmem:[%s812_s7] ss:$0 sm:$0xff] }
 0x4d2   : > { %v1430_v11 = vpop.permute.xlu0 %1429 }
 0x4d8   : > { %v1421_v10 = vpop.permute.xlu1 %1420 }
 0x4d9   : > { %1424 = vst.msk [vmem:[#allocation5] sm:$0xf] %vm1423_vm7, %v1421_v10 }
 0x4da   : > { %1433 = vst.msk [vmem:[#allocation5] sm:$0xf] %vm1432_vm8, %v1430_v11 }
 0x4e1   : > { %v1434_v12 = vld [vmem:[#allocation5] sm:$0xf] }
 0x4e2   : > { %2221 = vmatmul.mubr.msk.bf16.vlgmr.msra.gmra.mxu1 %vm839_vm2, %v1434_v12 }
 0x4e3   : > { %2240 = vmatprep.mubr.msk.bf16.mxu1 %vm2507_vm1, %v2506_v2  ;;  %2233 = vmatpush3.bf16.msra.mxu1 %v2352_v36 }
 0x4e4   : > { %2234 = vmatprep.subr.bf16.mxu1 %v2506_v2 }
 0x4e7   : > { %2235 = vmatpush3.bf16.msra.mxu1 %v2353_v37 }
 0x4e8   : > { %2236 = vmatprep.subr.bf16.mxu1 %v2506_v2 }
 0x4eb   : > { %2237 = vmatpush3.bf16.msra.mxu1 %v2354_v38 }
 0x4ec   : > { %2238 = vmatprep.subr.bf16.mxu1 %v2506_v2 }
 0x4ef   : > { %2239 = vmatpush3.bf16.msra.mxu1 %v2355_v39 }
 0x5a2   : > { %v1495_v14 = vpop.f32.mrf.mxu1 }
 0x5a3   : > { %v1496_v15 = vadd.f32 %v2090_v13, %v1495_v14 }
 0x5a4   : > { %v2222_v16 = vpop.f32.mrf.mxu1 }
 0x5a5   : > { %v1501_v17 = vadd.f32 %v1496_v15, %v2776_v4 }
 0x5a6   : > { %v1498_v7 = vpop.f32.mrf.mxu1 }
 0x5a7   : > { %v1504_v18 = vsel %vm839_vm2, %v1501_v17, 0.0 }
 0x5a8   : > { %1505 = vadd.xlane.f32.xlu1 %v1504_v18  ;;  %v2223_v19 = vpop.f32.mrf.mxu1 }
 0x631   : > { %v1506_v20 = vpop.xlane.xlu1 %1505 }
 0x632   : > { %v1508_v21 = vmul.f32 0.03125, %v1506_v20 }
 0x634   : > { %v1509_v22 = vsub.f32 %v1501_v17, %v1508_v21 }
 0x636   : > { %v1510_v23 = vmul.f32 %v1509_v22, %v1509_v22 }
 0x638   : > { %v1511_v24 = vsel %vm839_vm2, %v1510_v23, 0.0 }
 0x639   : > { %1512 = vadd.xlane.f32.xlu0 %v1511_v24 }
 0x6c2   : > { %v1513_v4 = vpop.xlane.xlu0 %1512 }
 0x6c3   : > { %v1514_v27 = vmul.f32 0.03125, %v1513_v4 }
 0x6c5   : > { %v1515_v28 = vadd.f32 1e-12, %v1514_v27 }
 0x6c7   : > { %2372 = vrsqrt.f32 %v1515_v28 }
 0x6d4   : > { %v2373_v29 = vpop.eup %2372 }
 0x6d5   : > { %v1517_v31 = vmul.f32 %v2373_v29, %v1509_v22 }
 0x6d7   : > { %v1524_v33 = vmul.f32 %v2094_v30, %v1517_v31 }
 0x6d9   : > { %v1531_v34 = vadd.f32 %v2095_v32, %v1524_v33 }
 0x6db   : > { %v1532_v35 = vpack.c.bf16 %v1531_v34, %v1531_v34 }
 0x6dd   : > { %2229 = vmatmul.mubr.msk.bf16.vlgmr.msra.gmra.mxu0 %vm839_vm2, %v1532_v35 }
 0x79d   : > { %v1593_v41 = vpop.f32.mrf.mxu0 }
 0x79e   : > { %v1594_v42 = vadd.f32 %v2096_v40, %v1593_v41 }
 0x79f   : > { %v2230_v43 = vpop.f32.mrf.mxu0 }
 0x7a0   : > { %v1600_v44 = vmul.f32 0.70710677, %v1594_v42  ;;  %v1599_v48 = vmul.f32 0.5, %v1594_v42 }
 0x7a1   : > { %v1596_v45 = vpop.f32.mrf.mxu0 }
 0x7a2   : > { %2374 = verf.f32 %v1600_v44 }
 0x7a3   : > { %v2231_v46 = vpop.f32.mrf.mxu0 }
 0x7af   : > { %v2375_v47 = vpop.eup %2374 }
 0x7b0   : > { %v1602_v49 = vadd.f32 1.0, %v2375_v47 }
 0x7b2   : > { %v1603_v50 = vmul.f32 %v1602_v49, %v1599_v48 }
 0x7b4   : > { %v1604_v2 = vpack.c.bf16 %v1603_v50, %v1603_v50 }
 0x7b6   : > { %2241 = vmatmul.mubr.msk.bf16.vlgmr.msra.gmra.mxu1 %vm1644_vm9, %v1604_v2 }
 0x876   : > { %v1682_v52 = vpop.f32.mrf.mxu1 }
 0x877   : > { %v1683_v53 = vadd.f32 %v2100_v51, %v1682_v52 }
 0x878   : > { %v2242_v54 = vpop.f32.mrf.mxu1 }
 0x879   : > { %v1688_v55 = vadd.f32 %v1683_v53, %v1531_v34 }
 0x87a   : > { %v1685_v56 = vpop.f32.mrf.mxu1 }
 0x87b   : > { %v1691_v57 = vsel %vm839_vm2, %v1688_v55, 0.0 }
 0x87c   : > { %1692 = vadd.xlane.f32.xlu0 %v1691_v57  ;;  %v2243_v58 = vpop.f32.mrf.mxu1 }
 0x905   : > { %v1693_v59 = vpop.xlane.xlu0 %1692 }
 0x906   : > { %v1694_v60 = vmul.f32 0.03125, %v1693_v59 }
 0x908   : > { %v1695_v61 = vsub.f32 %v1688_v55, %v1694_v60 }
 0x90a   : > { %v1696_v62 = vmul.f32 %v1695_v61, %v1695_v61 }
 0x90c   : > { %v1697_v63 = vsel %vm839_vm2, %v1696_v62, 0.0 }
 0x90d   : > { %1698 = vadd.xlane.f32.xlu1 %v1697_v63 }
 0x996   : > { %v1699_v0 = vpop.xlane.xlu1 %1698 }
 0x997   : > { %v1700_v1 = vmul.f32 0.03125, %v1699_v0 }
 0x999   : > { %v1701_v3 = vadd.f32 1e-12, %v1700_v1 }
 0x99b   : > { %2376 = vrsqrt.f32 %v1701_v3 }
 0x9a8   : > { %v2377_v5 = vpop.eup %2376 }
 0x9a9   : > { %v1703_v8 = vmul.f32 %v2377_v5, %v1695_v61 }
 0x9ab   : > { %v1710_v10 = vmul.f32 %v2106_v6, %v1703_v8  ;;  %1722 = sbr.rel (%p2108_p1) target bundleno = 2699 (0xa8b), region = 96 }
 0x9ad   : > { %v1717_v11 = vadd.f32 %v2107_v9, %v1710_v10 }
 0x9af   : > { %1718 = vst.msk [vmem:[%s2766_s2] sm:$0xff] %vm839_vm2, %v1717_v11 }
 0x9b0   : > { %v2378_v12 = vld [vmem:[%s3104_s20 + $0x8] sm:$0xff]   ;;  %v2522_v13 = vmov 0.0   ;;  %v2379_v14 = vld [vmem:[%s3105_s25] sm:$0xff]   ;;  %vm2523_vm10 = vmmov 0   ;;  %v1723_v15 = vpack.c.bf16 %v1717_v11, %v1717_v11  ;;  %vm1785_vm11 = vcmask 253952  }
 0x9b1   : > { %2244 = vmatprep.subr.bf16.mxu0 %v2522_v13  ;;  %2248 = vmatprep.mubr.msk.bf16.mxu0 %vm2523_vm10, %v2522_v13  ;;  %v1728_v16 = vld [vmem:[%s3106_s24] sm:$0x1] }
 0x9b2   : > { %2245 = vmatpush3.bf16.msra.mxu0 %v2378_v12 }
 0x9b3   : > { %2246 = vmatprep.subr.bf16.mxu0 %v2522_v13 }
 0x9b6   : > { %2247 = vmatpush3.bf16.msra.mxu0 %v2379_v14 }
 0x9b9   : > { %2249 = vmatmul.mubr.msk.bf16.vlgmr.msra.gmra.mxu0 %vm839_vm2, %v1723_v15 }
 0xa79   : > { %v1778_v17 = vpop.f32.mrf.mxu0 }
 0xa7a   : > { %v1779_v7 = vadd.f32 %v1778_v17, %v1728_v16 }
 0xa7b   : > { %v2250_v18 = vpop.f32.mrf.mxu0 }
 0xa7c   : > { %2380 = vtanh.f32 %v1779_v7 }
 0xa7d   : > { %v1781_v19 = vpop.f32.mrf.mxu0 }
 0xa7f   : > { %v2251_v20 = vpop.f32.mrf.mxu0 }
 0xa89   : > { %v2381_v21 = vpop.eup %2380 }
 0xa8a   : > { %1786 = vst.msk [vmem:[%s758_s21] sm:$0x1] %vm1785_vm11, %v2381_v21 }
 0xa8b PF: > { %s3107_s27 = sld [smem:[#allocation16_spill]]  ;;  %s1805_s8 = sshll.u32 %s2766_s2, 4  ;;  %s1806_s8 = int_to_ptr.vmem [resolvable:$true] %s1805_s8 }
 0xa8c   : > { %s3109_s5 = sld [smem:[#allocation39_spill]]  ;;  %s1788_s9 = scalar_lea.sflag [#allocation7], %s2691_s22 }
 0xa8d   : > { %s2382_s29 = scalar_lea.vmem %s1806_s8, 128  ;;  %s2524_s15 = smov [#allocation6]  }
 0xa8e   : > { %p2383_p2 = scmp.ne.s32.totalorder %s1806_s8, %s2382_s29  ;;  %s2386_s18 = sshll.u32 %s2524_s15, 4  ;;  %s2387_s18 = int_to_ptr.vmem [resolvable:$false] %s2386_s18 }
 0xa8f   : > { %s2388_s28 = scalar_lea.vmem %s2387_s18, 256  ;;  %p2389_p6 = scmp.lt.s32.totalorder %s1806_s8, %s2387_s18 }
 0xa90   : > { %p2384_p4 = pnand %p2383_p2, %p2670_p3  ;;  %p2390_p7 = scmp.lt.s32.totalorder %s2388_s28, %s2382_s29 }
 0xa91   : > { %s2113_s14 = sshll.u32 %s3107_s27, 7 }
 0xa92   : > { %s1803_s6 = scalar_lea.hbm %s3109_s5, %s2113_s14  ;;  %p2385_p5 = pneg %p2384_p4 }
 0xa93   : > { %p2391_p8 = por %p2390_p7, %p2389_p6 }
 0xa95   : > { %p2392_p10 = pnand %p2391_p8, %p2385_p5 }
 0xa97   : > { %2395 = shalt.err (!%p2392_p10)
}
 0xa98   : > { %s2396_s19 = scalar_lea.hbm %s1803_s6, 128  ;;  %s2400_s26 = scalar_lea.hbm %s3109_s5, 256 }
 0xa99   : > { %p2397_p11 = scmp.ne.s32.totalorder %s1803_s6, %s2396_s19  ;;  %p2401_p0 = scmp.lt.s32.totalorder %s1803_s6, %s3109_s5 }
 0xa9a   : > { %p2402_p1 = scmp.lt.s32.totalorder %s2400_s26, %s2396_s19 }
 0xa9b   : > { %p2398_p12 = pnand %p2397_p11, %p2670_p3 }
 0xa9c   : > { %p2403_p2 = por %p2402_p1, %p2401_p0 }
 0xa9d   : > { %p2399_p13 = pneg %p2398_p12 }
 0xa9f   : > { %p2404_p4 = pnand %p2403_p2, %p2399_p13 }
 0xaa1   : > { %2407 = shalt.err (!%p2404_p4)
}
 0xaa2   : > { %2252 = dma.vmem_to_hbm [thread:$0]  (%p2670_p3), %s1806_s8, 128, %s1803_s6, %s1788_s9  }
 0xaa3   : > { %s2114_s20 = sshll.u32 %s3107_s27, 4  ;;  %s1818_s13 = sshll.u32 %s758_s21, 4  ;;  %s1819_s13 = int_to_ptr.vmem [resolvable:$true] %s1818_s13 }
 0xaa4   : > { %s3110_s23 = sld [smem:[#allocation40_spill]]  ;;  %s1793_s14 = scalar_lea.sflag [#allocation9], %s2691_s22 }
 0xaa5   : > { %s2408_s17 = scalar_lea.vmem %s1819_s13, 16  ;;  %s2525_s11 = smov [#allocation8]  }
 0xaa6   : > { %p2409_p5 = scmp.ne.s32.totalorder %s1819_s13, %s2408_s17  ;;  %s2412_s29 = sshll.u32 %s2525_s11, 4  ;;  %s2413_s29 = int_to_ptr.vmem [resolvable:$false] %s2412_s29 }
 0xaa7   : > { %s2414_s15 = scalar_lea.vmem %s2413_s29, 32  ;;  %p2415_p8 = scmp.lt.s32.totalorder %s1819_s13, %s2413_s29 }
 0xaa8   : > { %p2410_p6 = pnand %p2409_p5, %p2670_p3  ;;  %p2416_p10 = scmp.lt.s32.totalorder %s2414_s15, %s2408_s17 }
 0xaaa   : > { %s1816_s24 = scalar_lea.hbm %s3110_s23, %s2114_s20  ;;  %p2411_p7 = pneg %p2410_p6 }
 0xaab   : > { %p2417_p11 = por %p2416_p10, %p2415_p8 }
 0xaad   : > { %p2418_p12 = pnand %p2417_p11, %p2411_p7 }
 0xaaf   : > { %2421 = shalt.err (!%p2418_p12)
}
 0xab0   : > { %s2422_s21 = scalar_lea.hbm %s1816_s24, 16  ;;  %s2426_s6 = scalar_lea.hbm %s3110_s23, 32 }
 0xab1   : > { %p2423_p13 = scmp.ne.s32.totalorder %s1816_s24, %s2422_s21  ;;  %p2427_p2 = scmp.lt.s32.totalorder %s1816_s24, %s3110_s23 }
 0xab2   : > { %p2428_p4 = scmp.lt.s32.totalorder %s2426_s6, %s2422_s21 }
 0xab3   : > { %p2424_p0 = pnand %p2423_p13, %p2670_p3 }
 0xab4   : > { %p2429_p5 = por %p2428_p4, %p2427_p2 }
 0xab5   : > { %p2425_p1 = pneg %p2424_p0 }
 0xab7   : > { %p2430_p6 = pnand %p2429_p5, %p2425_p1 }
 0xab9   : > { %2433 = shalt.err (!%p2430_p6)
}
 0xaba   : > { %2253 = dma.vmem_to_hbm [thread:$0]  (%p2670_p3), %s1819_s13, 16, %s1816_s24, %s1793_s14  }
 0xabb PF: > { %s3111_s18 = sld [smem:[#allocation19_spill]] }
 0xabc   : > { %s3112_s28 = sld [smem:[#allocation12_spill]] }
 0xac1   : > { %p2263_p7 = scmp.ge.s32.totalorder %s3111_s18, 2 }
 0xac2   : > { %s1830_s2 = sand.u32 1, %s3112_s28  }
 0xac3   : > { %p2257_p8 = pnand %p2263_p7, %p2680_p9  ;;  %s1831_s1 = scalar_lea.sflag [#allocation7], %s1830_s2 }
 0xac5   : > { %p2258_p10 = pneg %p2257_p8 }
 0xac7   : > { %2467 = dma.done.wait (%p2258_p10), %s1831_s1, 128  }
 0xac8   : > { %2469 = vsyncadd (%p2258_p10), %s1831_s1, 4294967168  ;;  %s1840_s26 = scalar_lea.sflag [#allocation9], %s1830_s2 }
 0xac9   : > { %2471 = dma.done.wait (%p2258_p10), %s1840_s26, 16  }
 0xaca   : > { %2473 = vsyncadd (%p2258_p10), %s1840_s26, 4294967280  ;;  %s35_s20 = sadd.s32 1, %s3111_s18   ;;  %s3114_s27 = sld [smem:[#allocation13_spill]] }
 0xacb   : > { %p32_p11 = scmp.ge.s32.totalorder %s35_s20, 6   ;;  %s3115_s28 = sld [smem:[#allocation14_spill]] }
 0xacc   : > { %s3116_s29 = sld [smem:[#allocation24_spill]] }
 0xacd   : > { %s3117_s30 = sld [smem:[#allocation17_spill]]  ;;  %34 = sbr.rel (!%p32_p11) target bundleno = 24 (0x18), region = 199 }
 0xace   : > { %s3118_s0 = sld [smem:[#allocation18_spill]] }
 0xacf   : > { %s3119_s19 = sld [smem:[#allocation20_spill]] }
 0xad0   : > { %s3120_s1 = sld [smem:[#allocation22_spill]] }
 0xad2   :  { %1844 = vsyncpa [#allocation7], 1 }
 0xad3   :  { %1846 = vsyncpa [#allocation7 + $0x1], 1 }
 0xad4   :  { %1847 = vsyncpa [#allocation9], 1 }
 0xad5   :  { %1849 = vsyncpa [#allocation9 + $0x1], 1 }

</bundles_post_ra>
